<compile_context>
chip_gen: v5e
topology: v5e:2x2
jax: 0.10.0
libtpu: 0.0.40
codegen_flags: <defaults>
</compile_context>

<pallas_src>
import jax
import jax.numpy as jnp
from jax.experimental import pallas as pl
from jax.experimental.pallas import tpu as pltpu


def _round_up(n, m):
    return ((n + m - 1) // m) * m


def _pick_tile(total, max_tile, multiple):
    """Largest divisor of `total` that is a multiple of `multiple`, <= max_tile."""
    best = multiple
    t = multiple
    limit = min(total, max_tile)
    while t <= limit:
        if total % t == 0:
            best = t
        t += multiple
    return best


def _vmem_limit_bytes():
    # ~3/4 of physical VMEM, capped at 96 MiB:
    #   v5e/v6e (128 MiB) -> 96 MiB, v7x (64 MiB) -> 48 MiB.
    cap = None
    try:
        cap = getattr(pltpu.get_tpu_info(), "vmem_capacity_bytes", None)
    except Exception:
        cap = None
    if not cap:
        cap = 64 * 1024 * 1024
    return int(min(cap * 3 // 4, 96 * 1024 * 1024))


# ---------------------------------------------------------------------------
# Kernels
# ---------------------------------------------------------------------------
def _mm_bias_relu_kernel(x_ref, w_ref, b_ref, o_ref):
    acc = jnp.dot(x_ref[...], w_ref[...], preferred_element_type=jnp.float32)
    o_ref[...] = jnp.maximum(acc + b_ref[...], 0.0).astype(o_ref.dtype)


def _mm_bias_add_relu_kernel(x_ref, w_ref, b_ref, res_ref, o_ref):
    acc = jnp.dot(x_ref[...], w_ref[...], preferred_element_type=jnp.float32)
    y = acc + b_ref[...] + res_ref[...].astype(jnp.float32)
    o_ref[...] = jnp.maximum(y, 0.0).astype(o_ref.dtype)


def _fused_dense(x, w, bias2d, identity=None, *, out_dtype=jnp.bfloat16,
                 max_tm=512, max_tn=512):
    """relu((x @ w) + bias [+ identity]) ; bf16 operands, f32 accumulation."""
    M, K = x.shape
    Kw, N = w.shape
    assert K == Kw and N % 128 == 0 and bias2d.shape == (1, N)

    # Pad M only to sublane granularity (8); no full-tile padding.
    Mp = _round_up(M, 8)
    if Mp != M:
        x = jnp.pad(x, ((0, Mp - M), (0, 0)))
        if identity is not None:
            identity = jnp.pad(identity, ((0, Mp - M), (0, 0)))
    tm = _pick_tile(Mp, max_tm, 8)
    tn = _pick_tile(N, max_tn, 128)
    grid = (Mp // tm, N // tn)

    x_spec = pl.BlockSpec((tm, K), lambda i, j: (i, 0))
    w_spec = pl.BlockSpec((K, tn), lambda i, j: (0, j))
    b_spec = pl.BlockSpec((1, tn), lambda i, j: (0, j))
    o_spec = pl.BlockSpec((tm, tn), lambda i, j: (i, j))

    bytes_accessed = (x.size * x.dtype.itemsize + w.size * w.dtype.itemsize
                      + bias2d.size * bias2d.dtype.itemsize
                      + Mp * N * jnp.dtype(out_dtype).itemsize)
    if identity is None:
        kernel = _mm_bias_relu_kernel
        in_specs = [x_spec, w_spec, b_spec]
        args = (x, w, bias2d)
    else:
        kernel = _mm_bias_add_relu_kernel
        in_specs = [x_spec, w_spec, b_spec, o_spec]
        args = (x, w, bias2d, identity)
        bytes_accessed += identity.size * identity.dtype.itemsize

    out = pl.pallas_call(
        kernel,
        out_shape=jax.ShapeDtypeStruct((Mp, N), out_dtype),
        grid_spec=pltpu.PrefetchScalarGridSpec(
            num_scalar_prefetch=0, grid=grid,
            in_specs=in_specs, out_specs=o_spec),
        compiler_params=pltpu.CompilerParams(
            dimension_semantics=("parallel", "parallel"),
            vmem_limit_bytes=_vmem_limit_bytes()),
        cost_estimate=pl.CostEstimate(
            flops=2 * Mp * K * N, transcendentals=0,
            bytes_accessed=int(bytes_accessed)),
    )(*args)
    return out if Mp == M else out[:M]


def _make_conv3x3_kernel(H, W, dil):
    def kernel(xp_ref, w_ref, b_ref, o_ref):
        C = o_ref.shape[-1]
        xp = xp_ref[...][0]                               # (H+2d, W+2d, C) bf16
        acc = jnp.zeros((H * W, C), jnp.float32)
        for kh in range(3):
            for kw in range(3):
                tap = xp[kh * dil:kh * dil + H, kw * dil:kw * dil + W, :]
                acc = acc + jnp.dot(tap.reshape(H * W, C), w_ref[kh * 3 + kw],
                                    preferred_element_type=jnp.float32)
        y = jnp.maximum(acc + b_ref[...], 0.0)
        o_ref[...] = y.reshape(1, H, W, C).astype(o_ref.dtype)
    return kernel


def _conv3x3_fused(xp, w9, bias2d, *, H, W, dil, out_dtype=jnp.bfloat16):
    """3x3 conv (stride 1, dilation `dil`) + folded-BN shift + relu.

    xp is the spatially halo-padded NHWC activation (B, H+2d, W+2d, C); the
    kernel reads it once per image (no im2col blowup) and accumulates nine
    shifted-slice matmuls against the resident (9, C, C) weight in f32.
    """
    B, Hp, Wp, C = xp.shape
    assert w9.shape == (9, C, C) and bias2d.shape == (1, C)
    kernel = _make_conv3x3_kernel(H, W, dil)
    bytes_accessed = (xp.size * xp.dtype.itemsize + w9.size * w9.dtype.itemsize
                      + bias2d.size * bias2d.dtype.itemsize
                      + B * H * W * C * jnp.dtype(out_dtype).itemsize)
    return pl.pallas_call(
        kernel,
        out_shape=jax.ShapeDtypeStruct((B, H, W, C), out_dtype),
        grid_spec=pltpu.PrefetchScalarGridSpec(
            num_scalar_prefetch=0, grid=(B,),
            in_specs=[pl.BlockSpec((1, Hp, Wp, C), lambda b: (b, 0, 0, 0)),
                      pl.BlockSpec((9, C, C), lambda b: (0, 0, 0)),
                      pl.BlockSpec((1, C), lambda b: (0, 0))],
            out_specs=pl.BlockSpec((1, H, W, C), lambda b: (b, 0, 0, 0))),
        compiler_params=pltpu.CompilerParams(
            dimension_semantics=("parallel",),
            vmem_limit_bytes=_vmem_limit_bytes()),
        cost_estimate=pl.CostEstimate(
            flops=2 * B * H * W * 9 * C * C, transcendentals=0,
            bytes_accessed=int(bytes_accessed)),
    )(xp, w9, bias2d)


# ---------------------------------------------------------------------------
# Parameter prep: fold BN (eval mode) into weights, pad channels, cast bf16
# ---------------------------------------------------------------------------
def _fold_bn(gamma, beta, mean, var, eps=1e-5):
    scale = gamma / jnp.sqrt(var + eps)
    shift = beta - mean * scale
    return scale, shift


def prepare_params(p, *, compute_dtype=jnp.bfloat16):
    s1, b1 = _fold_bn(*p["bn1"])
    s2, b2 = _fold_bn(*p["bn2"])
    s3, b3 = _fold_bn(*p["bn3"])

    w1, w2, w3 = p["w1"], p["w2"], p["w3"]   # (width,Cin), (O,I,3,3), (Cout,width)
    width, _cin = w1.shape
    cout = w3.shape[0]
    widthp = _round_up(width, 128)
    coutp = _round_up(cout, 128)

    # conv1: BN scale folded into output columns -> [Cin, widthp]
    w1f = (w1 * s1[:, None]).T
    # conv2: OIHW * scale_O -> (kh,kw,I,O) -> (9, I, O)
    w2f = jnp.transpose(w2 * s2[:, None, None, None], (2, 3, 1, 0)).reshape(9, width, width)
    # conv3: BN scale folded into output columns -> [widthp, Coutp]
    w3f = (w3 * s3[:, None]).T

    if widthp != width:
        w1f = jnp.pad(w1f, ((0, 0), (0, widthp - width)))
        w2f = jnp.pad(w2f, ((0, 0), (0, widthp - width), (0, widthp - width)))
        w3f = jnp.pad(w3f, ((0, widthp - width), (0, 0)))
        b1 = jnp.pad(b1, (0, widthp - width))
        b2 = jnp.pad(b2, (0, widthp - width))
    if coutp != cout:
        w3f = jnp.pad(w3f, ((0, 0), (0, coutp - cout)))
        b3 = jnp.pad(b3, (0, coutp - cout))

    return {
        "w1": w1f.astype(compute_dtype), "b1": b1.reshape(1, widthp).astype(jnp.float32),
        "w2": w2f.astype(compute_dtype), "b2": b2.reshape(1, widthp).astype(jnp.float32),
        "w3": w3f.astype(compute_dtype), "b3": b3.reshape(1, coutp).astype(jnp.float32),
    }


# ---------------------------------------------------------------------------
# Bottleneck forward (downsample=None, groups=1, stride=1)
# ---------------------------------------------------------------------------
def bottleneck_forward(x, kp, *, stride=1, dilation=1):
    # TODO(synk): downsample shortcut (conv1x1 + BN on x) not implemented; the
    # module default downsample=None (identity shortcut) is supported here.
    assert stride == 1, "identity shortcut (downsample=None) requires stride == 1"
    B, Cin, H, W = x.shape
    widthp = kp["w1"].shape[1]
    coutp = kp["w3"].shape[1]
    cout = Cin                       # identity shortcut -> Cout == Cin

    x_nhwc = jnp.transpose(x, (0, 2, 3, 1))          # channels -> lane axis
    x2d = x_nhwc.reshape(B * H * W, Cin).astype(jnp.bfloat16)

    # conv1 (1x1) + bn1 + relu
    y1 = _fused_dense(x2d, kp["w1"], kp["b1"], out_dtype=jnp.bfloat16)

    # conv2 (3x3, padding=dilation) + bn2 + relu, halo-padded Pallas conv.
    d = dilation
    y1p = jnp.pad(y1.reshape(B, H, W, widthp), ((0, 0), (d, d), (d, d), (0, 0)))
    y2 = _conv3x3_fused(y1p, kp["w2"], kp["b2"], H=H, W=W, dil=d)
    y2_2d = y2.reshape(B * H * W, widthp)

    # conv3 (1x1) + bn3 + identity + relu (residual add fused in the kernel).
    ident = x2d if coutp == Cin else jnp.pad(x2d, ((0, 0), (0, coutp - Cin)))
    out2d = _fused_dense(y2_2d, kp["w3"], kp["b3"], identity=ident,
                         out_dtype=jnp.float32)
    if coutp != cout:
        out2d = out2d[:, :cout]
    return jnp.transpose(out2d.reshape(B, H, W, cout), (0, 3, 1, 2))


# ---------------------------------------------------------------------------
# Pure-JAX f32 reference of the same forward (independent math path)
# ---------------------------------------------------------------------------
def bottleneck_reference(x, p, *, stride=1, dilation=1, eps=1e-5):
    def bn(y, bnp):
        gamma, beta, mean, var = bnp
        s = gamma / jnp.sqrt(var + eps)
        return y * s[None, :, None, None] + (beta - mean * s)[None, :, None, None]

    def conv(y, w, stride=1, padding=0, dilation=1):
        return jax.lax.conv_general_dilated(
            y, w, window_strides=(stride, stride),
            padding=((padding, padding), (padding, padding)),
            rhs_dilation=(dilation, dilation),
            dimension_numbers=("NCHW", "OIHW", "NCHW"))

    out = jax.nn.relu(bn(conv(x, p["w1"][:, :, None, None]), p["bn1"]))
    out = jax.nn.relu(bn(conv(out, p["w2"], stride=stride, padding=dilation,
                              dilation=dilation), p["bn2"]))
    out = bn(conv(out, p["w3"][:, :, None, None]), p["bn3"])
    return jax.nn.relu(out + x)          # downsample is None -> identity


if __name__ == "__main__":
    # Module-consistent small shapes: planes=16 -> width=16 (base_width=64,
    # groups=1), inplanes = planes * expansion = 64, batch=2, 8x8 spatial.
    batch, planes, H, W = 2, 16, 8, 8
    width = planes
    inplanes = planes * 4

    key = jax.random.PRNGKey(0)
    ks = list(jax.random.split(key, 16))

    def rnd(k, shape, s=0.05):
        return jax.random.normal(k, shape, dtype=jnp.float32) * s

    def rnd_bn(k1, k2, k3, k4, c):
        gamma = 1.0 + rnd(k1, (c,), 0.1)
        beta = rnd(k2, (c,), 0.1)
        mean = rnd(k3, (c,), 0.1)
        var = 0.5 + jnp.abs(rnd(k4, (c,), 0.5))
        return (gamma, beta, mean, var)

    x = jax.random.normal(ks[0], (batch, inplanes, H, W), dtype=jnp.float32)
    params = {
        "w1": rnd(ks[1], (width, inplanes)),
        "bn1": rnd_bn(ks[2], ks[3], ks[4], ks[5], width),
        "w2": rnd(ks[6], (width, width, 3, 3)),
        "bn2": rnd_bn(ks[7], ks[8], ks[9], ks[10], width),
        "w3": rnd(ks[11], (inplanes, width)),
        "bn3": rnd_bn(ks[12], ks[13], ks[14], ks[15], inplanes),
    }

    kp = prepare_params(params)
    out = jax.jit(bottleneck_forward)(x, kp)
    out = jax.block_until_ready(out)

    ref = bottleneck_reference(x, params)
    assert out.shape == (batch, inplanes, H, W)
    err = float(jnp.max(jnp.abs(out - ref)))
    # bf16 operands (f32 accumulation) -> relaxed tolerance vs the f32 reference.
    assert jnp.allclose(out, ref, atol=5e-2, rtol=5e-2), f"max abs err {err}"

    print("KERNEL_OK")
</pallas_src>

<mosaic_0001>
module attributes {stable_mosaic.version = 11 : i64} {
  func.func @_mm_bias_relu_kernel(%arg0: i32, %arg1: i32, %arg2: memref<128x64xbf16, #tpu.memory_space<vmem>>, %arg3: memref<64x128xbf16, #tpu.memory_space<vmem>>, %arg4: memref<1x128xf32, #tpu.memory_space<vmem>>, %arg5: memref<128x128xbf16, #tpu.memory_space<vmem>>) attributes {dimension_semantics = [#tpu.dimension_semantics<parallel>, #tpu.dimension_semantics<parallel>], iteration_bounds = array<i64: 1, 1>, scalar_prefetch = 0 : i64, scratch_operands = 0 : i64, tpu.core_type = #tpu.core_type<tc>, window_params = [{transform_indices = @transform_0, window_bounds = array<i64: 128, 64>}, {transform_indices = @transform_1, window_bounds = array<i64: 64, 128>}, {transform_indices = @transform_2, window_bounds = array<i64: 1, 128>}, {transform_indices = @transform_3, window_bounds = array<i64: 128, 128>}]} {
    %c0 = arith.constant 0 : index
    %c0_0 = arith.constant 0 : index
    %0 = vector.load %arg2[%c0, %c0_0] : memref<128x64xbf16, #tpu.memory_space<vmem>>, vector<128x64xbf16>
    %c0_1 = arith.constant 0 : index
    %c0_2 = arith.constant 0 : index
    %1 = vector.load %arg3[%c0_1, %c0_2] : memref<64x128xbf16, #tpu.memory_space<vmem>>, vector<64x128xbf16>
    %cst = arith.constant dense<0.000000e+00> : vector<128x128xf32>
    %2 = tpu.matmul %0, %1, %cst {dimension_numbers = #tpu.dot_dimension_numbers<[1], [0], [0], [1], [0, 0, 1, 1], [], []>} : vector<128x64xbf16>, vector<64x128xbf16>, vector<128x128xf32> -> vector<128x128xf32>
    %c0_3 = arith.constant 0 : index
    %c0_4 = arith.constant 0 : index
    %3 = vector.load %arg4[%c0_3, %c0_4] : memref<1x128xf32, #tpu.memory_space<vmem>>, vector<1x128xf32>
    %4 = vector.broadcast %3 : vector<1x128xf32> to vector<128x128xf32>
    %5 = arith.addf %2, %4 : vector<128x128xf32>
    %cst_5 = arith.constant 0.000000e+00 : f32
    %6 = vector.broadcast %cst_5 : f32 to vector<128x128xf32>
    %7 = arith.maximumf %5, %6 : vector<128x128xf32>
    %8 = arith.truncf %7 : vector<128x128xf32> to vector<128x128xbf16>
    %c0_6 = arith.constant 0 : index
    %c0_7 = arith.constant 0 : index
    %9 = vector.load %arg5[%c0_6, %c0_7] : memref<128x128xbf16, #tpu.memory_space<vmem>>, vector<128x128xbf16>
    tpu.vector_store %arg5[%c0_6, %c0_7], %8 {strides = array<i32>} : memref<128x128xbf16, #tpu.memory_space<vmem>>, vector<128x128xbf16>,
    return
  }
  func.func @transform_0(%arg0: i32, %arg1: i32) -> (i32, i32) {
    %c0_i32 = arith.constant 0 : i32
    %c0_i32_0 = arith.constant 0 : i32
    return %arg0, %c0_i32 : i32, i32
  }
  func.func @transform_1(%arg0: i32, %arg1: i32) -> (i32, i32) {
    %c0_i32 = arith.constant 0 : i32
    %c0_i32_0 = arith.constant 0 : i32
    return %c0_i32, %arg1 : i32, i32
  }
  func.func @transform_2(%arg0: i32, %arg1: i32) -> (i32, i32) {
    %c0_i32 = arith.constant 0 : i32
    %c0_i32_0 = arith.constant 0 : i32
    return %c0_i32, %arg1 : i32, i32
  }
  func.func @transform_3(%arg0: i32, %arg1: i32) -> (i32, i32) {
    %c0_i32 = arith.constant 0 : i32
    return %arg0, %arg1 : i32, i32
  }
}

module attributes {stable_mosaic.version = 11 : i64} {
  func.func @kernel(%arg0: i32, %arg1: memref<1x10x10x128xbf16, #tpu.memory_space<vmem>>, %arg2: memref<9x128x128xbf16, #tpu.memory_space<vmem>>, %arg3: memref<1x128xf32, #tpu.memory_space<vmem>>, %arg4: memref<1x8x8x128xbf16, #tpu.memory_space<vmem>>) attributes {dimension_semantics = [#tpu.dimension_semantics<parallel>], iteration_bounds = array<i64: 2>, scalar_prefetch = 0 : i64, scratch_operands = 0 : i64, tpu.core_type = #tpu.core_type<tc>, window_params = [{transform_indices = @transform_0, window_bounds = array<i64: 1, 10, 10, 128>}, {pipeline_mode = #tpu.pipeline_mode<synchronous>, transform_indices = @transform_1, window_bounds = array<i64: 9, 128, 128>}, {pipeline_mode = #tpu.pipeline_mode<synchronous>, transform_indices = @transform_2, window_bounds = array<i64: 1, 128>}, {transform_indices = @transform_3, window_bounds = array<i64: 1, 8, 8, 128>}]} {
    %c0 = arith.constant 0 : index
    %c0_0 = arith.constant 0 : index
    %c0_1 = arith.constant 0 : index
    %c0_2 = arith.constant 0 : index
    %0 = vector.load %arg1[%c0, %c0_0, %c0_1, %c0_2] : memref<1x10x10x128xbf16, #tpu.memory_space<vmem>>, vector<1x10x10x128xbf16>
    %1 = vector.shape_cast %0 : vector<1x10x10x128xbf16> to vector<10x10x128xbf16>
    %cst = arith.constant 0.000000e+00 : f32
    %2 = vector.broadcast %cst : f32 to vector<64x128xf32>
    %3 = vector.extract_strided_slice %1 {offsets = [0, 0, 0], sizes = [8, 8, 128], strides = [1, 1, 1]} : vector<10x10x128xbf16> to vector<8x8x128xbf16>
    %4 = vector.shape_cast %3 : vector<8x8x128xbf16> to vector<64x128xbf16>
    %c0_3 = arith.constant 0 : index
    %c0_4 = arith.constant 0 : index
    %c0_5 = arith.constant 0 : index
    %5 = vector.load %arg2[%c0_3, %c0_4, %c0_5] : memref<9x128x128xbf16, #tpu.memory_space<vmem>>, vector<1x128x128xbf16>
    %6 = vector.shape_cast %5 : vector<1x128x128xbf16> to vector<128x128xbf16>
    %cst_6 = arith.constant dense<0.000000e+00> : vector<64x128xf32>
    %7 = tpu.matmul %4, %6, %cst_6 {dimension_numbers = #tpu.dot_dimension_numbers<[1], [0], [0], [1], [0, 0, 1, 1], [], []>} : vector<64x128xbf16>, vector<128x128xbf16>, vector<64x128xf32> -> vector<64x128xf32>
    %8 = arith.addf %2, %7 : vector<64x128xf32>
    %9 = vector.extract_strided_slice %1 {offsets = [0, 1, 0], sizes = [8, 8, 128], strides = [1, 1, 1]} : vector<10x10x128xbf16> to vector<8x8x128xbf16>
    %10 = vector.shape_cast %9 : vector<8x8x128xbf16> to vector<64x128xbf16>
    %c1 = arith.constant 1 : index
    %c0_7 = arith.constant 0 : index
    %c0_8 = arith.constant 0 : index
    %11 = vector.load %arg2[%c1, %c0_7, %c0_8] : memref<9x128x128xbf16, #tpu.memory_space<vmem>>, vector<1x128x128xbf16>
    %12 = vector.shape_cast %11 : vector<1x128x128xbf16> to vector<128x128xbf16>
    %cst_9 = arith.constant dense<0.000000e+00> : vector<64x128xf32>
    %13 = tpu.matmul %10, %12, %cst_9 {dimension_numbers = #tpu.dot_dimension_numbers<[1], [0], [0], [1], [0, 0, 1, 1], [], []>} : vector<64x128xbf16>, vector<128x128xbf16>, vector<64x128xf32> -> vector<64x128xf32>
    %14 = arith.addf %8, %13 : vector<64x128xf32>
    %15 = vector.extract_strided_slice %1 {offsets = [0, 2, 0], sizes = [8, 8, 128], strides = [1, 1, 1]} : vector<10x10x128xbf16> to vector<8x8x128xbf16>
    %16 = vector.shape_cast %15 : vector<8x8x128xbf16> to vector<64x128xbf16>
    %c2 = arith.constant 2 : index
    %c0_10 = arith.constant 0 : index
    %c0_11 = arith.constant 0 : index
    %17 = vector.load %arg2[%c2, %c0_10, %c0_11] : memref<9x128x128xbf16, #tpu.memory_space<vmem>>, vector<1x128x128xbf16>
    %18 = vector.shape_cast %17 : vector<1x128x128xbf16> to vector<128x128xbf16>
    %cst_12 = arith.constant dense<0.000000e+00> : vector<64x128xf32>
    %19 = tpu.matmul %16, %18, %cst_12 {dimension_numbers = #tpu.dot_dimension_numbers<[1], [0], [0], [1], [0, 0, 1, 1], [], []>} : vector<64x128xbf16>, vector<128x128xbf16>, vector<64x128xf32> -> vector<64x128xf32>
    %20 = arith.addf %14, %19 : vector<64x128xf32>
    %21 = vector.extract_strided_slice %1 {offsets = [1, 0, 0], sizes = [8, 8, 128], strides = [1, 1, 1]} : vector<10x10x128xbf16> to vector<8x8x128xbf16>
    %22 = vector.shape_cast %21 : vector<8x8x128xbf16> to vector<64x128xbf16>
    %c3 = arith.constant 3 : index
    %c0_13 = arith.constant 0 : index
    %c0_14 = arith.constant 0 : index
    %23 = vector.load %arg2[%c3, %c0_13, %c0_14] : memref<9x128x128xbf16, #tpu.memory_space<vmem>>, vector<1x128x128xbf16>
    %24 = vector.shape_cast %23 : vector<1x128x128xbf16> to vector<128x128xbf16>
    %cst_15 = arith.constant dense<0.000000e+00> : vector<64x128xf32>
    %25 = tpu.matmul %22, %24, %cst_15 {dimension_numbers = #tpu.dot_dimension_numbers<[1], [0], [0], [1], [0, 0, 1, 1], [], []>} : vector<64x128xbf16>, vector<128x128xbf16>, vector<64x128xf32> -> vector<64x128xf32>
    %26 = arith.addf %20, %25 : vector<64x128xf32>
    %27 = vector.extract_strided_slice %1 {offsets = [1, 1, 0], sizes = [8, 8, 128], strides = [1, 1, 1]} : vector<10x10x128xbf16> to vector<8x8x128xbf16>
    %28 = vector.shape_cast %27 : vector<8x8x128xbf16> to vector<64x128xbf16>
    %c4 = arith.constant 4 : index
    %c0_16 = arith.constant 0 : index
    %c0_17 = arith.constant 0 : index
    %29 = vector.load %arg2[%c4, %c0_16, %c0_17] : memref<9x128x128xbf16, #tpu.memory_space<vmem>>, vector<1x128x128xbf16>
    %30 = vector.shape_cast %29 : vector<1x128x128xbf16> to vector<128x128xbf16>
    %cst_18 = arith.constant dense<0.000000e+00> : vector<64x128xf32>
    %31 = tpu.matmul %28, %30, %cst_18 {dimension_numbers = #tpu.dot_dimension_numbers<[1], [0], [0], [1], [0, 0, 1, 1], [], []>} : vector<64x128xbf16>, vector<128x128xbf16>, vector<64x128xf32> -> vector<64x128xf32>
    %32 = arith.addf %26, %31 : vector<64x128xf32>
    %33 = vector.extract_strided_slice %1 {offsets = [1, 2, 0], sizes = [8, 8, 128], strides = [1, 1, 1]} : vector<10x10x128xbf16> to vector<8x8x128xbf16>
    %34 = vector.shape_cast %33 : vector<8x8x128xbf16> to vector<64x128xbf16>
    %c5 = arith.constant 5 : index
    %c0_19 = arith.constant 0 : index
    %c0_20 = arith.constant 0 : index
    %35 = vector.load %arg2[%c5, %c0_19, %c0_20] : memref<9x128x128xbf16, #tpu.memory_space<vmem>>, vector<1x128x128xbf16>
    %36 = vector.shape_cast %35 : vector<1x128x128xbf16> to vector<128x128xbf16>
    %cst_21 = arith.constant dense<0.000000e+00> : vector<64x128xf32>
    %37 = tpu.matmul %34, %36, %cst_21 {dimension_numbers = #tpu.dot_dimension_numbers<[1], [0], [0], [1], [0, 0, 1, 1], [], []>} : vector<64x128xbf16>, vector<128x128xbf16>, vector<64x128xf32> -> vector<64x128xf32>
    %38 = arith.addf %32, %37 : vector<64x128xf32>
    %39 = vector.extract_strided_slice %1 {offsets = [2, 0, 0], sizes = [8, 8, 128], strides = [1, 1, 1]} : vector<10x10x128xbf16> to vector<8x8x128xbf16>
    %40 = vector.shape_cast %39 : vector<8x8x128xbf16> to vector<64x128xbf16>
    %c6 = arith.constant 6 : index
    %c0_22 = arith.constant 0 : index
    %c0_23 = arith.constant 0 : index
    %41 = vector.load %arg2[%c6, %c0_22, %c0_23] : memref<9x128x128xbf16, #tpu.memory_space<vmem>>, vector<1x128x128xbf16>
    %42 = vector.shape_cast %41 : vector<1x128x128xbf16> to vector<128x128xbf16>
    %cst_24 = arith.constant dense<0.000000e+00> : vector<64x128xf32>
    %43 = tpu.matmul %40, %42, %cst_24 {dimension_numbers = #tpu.dot_dimension_numbers<[1], [0], [0], [1], [0, 0, 1, 1], [], []>} : vector<64x128xbf16>, vector<128x128xbf16>, vector<64x128xf32> -> vector<64x128xf32>
    %44 = arith.addf %38, %43 : vector<64x128xf32>
    %45 = vector.extract_strided_slice %1 {offsets = [2, 1, 0], sizes = [8, 8, 128], strides = [1, 1, 1]} : vector<10x10x128xbf16> to vector<8x8x128xbf16>
    %46 = vector.shape_cast %45 : vector<8x8x128xbf16> to vector<64x128xbf16>
    %c7 = arith.constant 7 : index
    %c0_25 = arith.constant 0 : index
    %c0_26 = arith.constant 0 : index
    %47 = vector.load %arg2[%c7, %c0_25, %c0_26] : memref<9x128x128xbf16, #tpu.memory_space<vmem>>, vector<1x128x128xbf16>
    %48 = vector.shape_cast %47 : vector<1x128x128xbf16> to vector<128x128xbf16>
    %cst_27 = arith.constant dense<0.000000e+00> : vector<64x128xf32>
    %49 = tpu.matmul %46, %48, %cst_27 {dimension_numbers = #tpu.dot_dimension_numbers<[1], [0], [0], [1], [0, 0, 1, 1], [], []>} : vector<64x128xbf16>, vector<128x128xbf16>, vector<64x128xf32> -> vector<64x128xf32>
    %50 = arith.addf %44, %49 : vector<64x128xf32>
    %51 = vector.extract_strided_slice %1 {offsets = [2, 2, 0], sizes = [8, 8, 128], strides = [1, 1, 1]} : vector<10x10x128xbf16> to vector<8x8x128xbf16>
    %52 = vector.shape_cast %51 : vector<8x8x128xbf16> to vector<64x128xbf16>
    %c8 = arith.constant 8 : index
    %c0_28 = arith.constant 0 : index
    %c0_29 = arith.constant 0 : index
    %53 = vector.load %arg2[%c8, %c0_28, %c0_29] : memref<9x128x128xbf16, #tpu.memory_space<vmem>>, vector<1x128x128xbf16>
    %54 = vector.shape_cast %53 : vector<1x128x128xbf16> to vector<128x128xbf16>
    %cst_30 = arith.constant dense<0.000000e+00> : vector<64x128xf32>
    %55 = tpu.matmul %52, %54, %cst_30 {dimension_numbers = #tpu.dot_dimension_numbers<[1], [0], [0], [1], [0, 0, 1, 1], [], []>} : vector<64x128xbf16>, vector<128x128xbf16>, vector<64x128xf32> -> vector<64x128xf32>
    %56 = arith.addf %50, %55 : vector<64x128xf32>
    %c0_31 = arith.constant 0 : index
    %c0_32 = arith.constant 0 : index
    %57 = vector.load %arg3[%c0_31, %c0_32] : memref<1x128xf32, #tpu.memory_space<vmem>>, vector<1x128xf32>
    %58 = vector.broadcast %57 : vector<1x128xf32> to vector<64x128xf32>
    %59 = arith.addf %56, %58 : vector<64x128xf32>
    %cst_33 = arith.constant 0.000000e+00 : f32
    %60 = vector.broadcast %cst_33 : f32 to vector<64x128xf32>
    %61 = arith.maximumf %59, %60 : vector<64x128xf32>
    %62 = vector.shape_cast %61 : vector<64x128xf32> to vector<1x8x8x128xf32>
    %63 = arith.truncf %62 : vector<1x8x8x128xf32> to vector<1x8x8x128xbf16>
    %c0_34 = arith.constant 0 : index
    %c0_35 = arith.constant 0 : index
    %c0_36 = arith.constant 0 : index
    %c0_37 = arith.constant 0 : index
    %64 = vector.load %arg4[%c0_34, %c0_35, %c0_36, %c0_37] : memref<1x8x8x128xbf16, #tpu.memory_space<vmem>>, vector<1x8x8x128xbf16>
    tpu.vector_store %arg4[%c0_34, %c0_35, %c0_36, %c0_37], %63 {strides = array<i32>} : memref<1x8x8x128xbf16, #tpu.memory_space<vmem>>, vector<1x8x8x128xbf16>,
    return
  }
  func.func @transform_0(%arg0: i32) -> (i32, i32, i32, i32) {
    %c0_i32 = arith.constant 0 : i32
    %c0_i32_0 = arith.constant 0 : i32
    %c0_i32_1 = arith.constant 0 : i32
    %c0_i32_2 = arith.constant 0 : i32
    return %arg0, %c0_i32, %c0_i32_0, %c0_i32_1 : i32, i32, i32, i32
  }
  func.func @transform_1(%arg0: i32) -> (i32, i32, i32) {
    %c0_i32 = arith.constant 0 : i32
    %c0_i32_0 = arith.constant 0 : i32
    %c0_i32_1 = arith.constant 0 : i32
    %c0_i32_2 = arith.constant 0 : i32
    return %c0_i32, %c0_i32_0, %c0_i32_1 : i32, i32, i32
  }
  func.func @transform_2(%arg0: i32) -> (i32, i32) {
    %c0_i32 = arith.constant 0 : i32
    %c0_i32_0 = arith.constant 0 : i32
    %c0_i32_1 = arith.constant 0 : i32
    return %c0_i32, %c0_i32_0 : i32, i32
  }
  func.func @transform_3(%arg0: i32) -> (i32, i32, i32, i32) {
    %c0_i32 = arith.constant 0 : i32
    %c0_i32_0 = arith.constant 0 : i32
    %c0_i32_1 = arith.constant 0 : i32
    %c0_i32_2 = arith.constant 0 : i32
    return %arg0, %c0_i32, %c0_i32_0, %c0_i32_1 : i32, i32, i32, i32
  }
}

module attributes {stable_mosaic.version = 11 : i64} {
  func.func @_mm_bias_add_relu_kernel(%arg0: i32, %arg1: i32, %arg2: memref<128x128xbf16, #tpu.memory_space<vmem>>, %arg3: memref<128x128xbf16, #tpu.memory_space<vmem>>, %arg4: memref<1x128xf32, #tpu.memory_space<vmem>>, %arg5: memref<128x128xbf16, #tpu.memory_space<vmem>>, %arg6: memref<128x128xf32, #tpu.memory_space<vmem>>) attributes {dimension_semantics = [#tpu.dimension_semantics<parallel>, #tpu.dimension_semantics<parallel>], iteration_bounds = array<i64: 1, 1>, scalar_prefetch = 0 : i64, scratch_operands = 0 : i64, tpu.core_type = #tpu.core_type<tc>, window_params = [{transform_indices = @transform_0, window_bounds = array<i64: 128, 128>}, {transform_indices = @transform_1, window_bounds = array<i64: 128, 128>}, {transform_indices = @transform_2, window_bounds = array<i64: 1, 128>}, {transform_indices = @transform_3, window_bounds = array<i64: 128, 128>}, {transform_indices = @transform_4, window_bounds = array<i64: 128, 128>}]} {
    %c0 = arith.constant 0 : index
    %c0_0 = arith.constant 0 : index
    %0 = vector.load %arg2[%c0, %c0_0] : memref<128x128xbf16, #tpu.memory_space<vmem>>, vector<128x128xbf16>
    %c0_1 = arith.constant 0 : index
    %c0_2 = arith.constant 0 : index
    %1 = vector.load %arg3[%c0_1, %c0_2] : memref<128x128xbf16, #tpu.memory_space<vmem>>, vector<128x128xbf16>
    %cst = arith.constant dense<0.000000e+00> : vector<128x128xf32>
    %2 = tpu.matmul %0, %1, %cst {dimension_numbers = #tpu.dot_dimension_numbers<[1], [0], [0], [1], [0, 0, 1, 1], [], []>} : vector<128x128xbf16>, vector<128x128xbf16>, vector<128x128xf32> -> vector<128x128xf32>
    %c0_3 = arith.constant 0 : index
    %c0_4 = arith.constant 0 : index
    %3 = vector.load %arg4[%c0_3, %c0_4] : memref<1x128xf32, #tpu.memory_space<vmem>>, vector<1x128xf32>
    %4 = vector.broadcast %3 : vector<1x128xf32> to vector<128x128xf32>
    %5 = arith.addf %2, %4 : vector<128x128xf32>
    %c0_5 = arith.constant 0 : index
    %c0_6 = arith.constant 0 : index
    %6 = vector.load %arg5[%c0_5, %c0_6] : memref<128x128xbf16, #tpu.memory_space<vmem>>, vector<128x128xbf16>
    %7 = arith.extf %6 : vector<128x128xbf16> to vector<128x128xf32>
    %8 = arith.addf %5, %7 : vector<128x128xf32>
    %cst_7 = arith.constant 0.000000e+00 : f32
    %9 = vector.broadcast %cst_7 : f32 to vector<128x128xf32>
    %10 = arith.maximumf %8, %9 : vector<128x128xf32>
    %c0_8 = arith.constant 0 : index
    %c0_9 = arith.constant 0 : index
    %11 = vector.load %arg6[%c0_8, %c0_9] : memref<128x128xf32, #tpu.memory_space<vmem>>, vector<128x128xf32>
    tpu.vector_store %arg6[%c0_8, %c0_9], %10 {strides = array<i32>} : memref<128x128xf32, #tpu.memory_space<vmem>>, vector<128x128xf32>,
    return
  }
  func.func @transform_0(%arg0: i32, %arg1: i32) -> (i32, i32) {
    %c0_i32 = arith.constant 0 : i32
    %c0_i32_0 = arith.constant 0 : i32
    return %arg0, %c0_i32 : i32, i32
  }
  func.func @transform_1(%arg0: i32, %arg1: i32) -> (i32, i32) {
    %c0_i32 = arith.constant 0 : i32
    %c0_i32_0 = arith.constant 0 : i32
    return %c0_i32, %arg1 : i32, i32
  }
  func.func @transform_2(%arg0: i32, %arg1: i32) -> (i32, i32) {
    %c0_i32 = arith.constant 0 : i32
    %c0_i32_0 = arith.constant 0 : i32
    return %c0_i32, %arg1 : i32, i32
  }
  func.func @transform_3(%arg0: i32, %arg1: i32) -> (i32, i32) {
    %c0_i32 = arith.constant 0 : i32
    return %arg0, %arg1 : i32, i32
  }
  func.func @transform_4(%arg0: i32, %arg1: i32) -> (i32, i32) {
    %c0_i32 = arith.constant 0 : i32
    return %arg0, %arg1 : i32, i32
  }
}

</mosaic_0001>

<bundles_post_ra>
// kernel: bottleneck_forward.5
= control target key start
LH: loop header
LB: loop body
LE: loop exit
PB: predicated region body
PF: predicated region fallthrough
CT: control target
= control target key end

     0   :  { %s594_s0 = inlined_call_operand.vmem [shape: bf16[128,128], index: 0, kind: input, shape index: {}]   ;;  %s595_s1 = inlined_call_operand.vmem [shape: bf16[128,128], index: 1, kind: input, shape index: {}]   ;;  %s596_s2 = inlined_call_operand.vmem [shape: f32[1,128], index: 2, kind: input, shape index: {}]   ;;  %s597_s3 = inlined_call_operand.vmem [shape: bf16[128,128], index: 3, kind: input, shape index: {}]   ;;  %s598_s4 = inlined_call_operand.hbm [shape: f32[128,128], index: 4, kind: output, shape index: {}]  }
   0x1   :  { %v376_v0 = vld [vmem:[%s595_s1 + $0x38] sm:$0xff]  ;;  %v375_v1 = vld [vmem:[%s595_s1 + $0x30] sm:$0xff] }
   0x2   :  { %150 = vmatpush.bf16.msra.mxu0 %v376_v0  ;;  %416 = vmatpush.bf16.msra.mxu1 %v376_v0 }
   0x3   :  { %417 = vmatpush.bf16.msra.mxu2 %v376_v0  ;;  %418 = vmatpush.bf16.msra.mxu3 %v376_v0 }
   0x4   :  { %9 = vsyncpa [#allocation3], 0  ;;  %v374_v2 = vld [vmem:[%s595_s1 + $0x28] sm:$0xff]  ;;  %v373_v3 = vld [vmem:[%s595_s1 + $0x20] sm:$0xff]  ;;  %s471_s13 = smov 128   ;;  %s472_s14 = smov 8  }
   0x5   :  { %v372_v4 = vld [vmem:[%s595_s1 + $0x18] sm:$0xff]  ;;  %v371_v5 = vld [vmem:[%s595_s1 + $0x10] sm:$0xff]  ;;  %v370_v6 = vld [vmem:[%s595_s1 + $0x8] sm:$0xff] }
   0x6   :  { %151 = vmatpush.bf16.msra.mxu0 %v375_v1  ;;  %419 = vmatpush.bf16.msra.mxu1 %v375_v1  ;;  %v369_v7 = vld [vmem:[%s595_s1] sm:$0xff]  ;;  %v363_v9 = vld [vmem:[%s594_s0 + $0x10] sm:$0xff]  ;;  %v362_v12 = vld [vmem:[%s594_s0 + $0x8] sm:$0xff]  ;;  %s285_s1 = sshll.u32 %s598_s4, 4  ;;  %s286_s1 = int_to_ptr.hbm [resolvable:$true] %s285_s1 }
   0x7   :  { %420 = vmatpush.bf16.msra.mxu2 %v375_v1  ;;  %421 = vmatpush.bf16.msra.mxu3 %v375_v1  ;;  %v361_v8 = vld [vmem:[%s594_s0] sm:$0xff]  ;;  %v367_v11 = vld [vmem:[%s594_s0 + $0x30] sm:$0xff]  ;;  %v364_v13 = vld [vmem:[%s594_s0 + $0x18] sm:$0xff] }
   0x8   :  { %v365_v10 = vld [vmem:[%s594_s0 + $0x20] sm:$0xff]  ;;  %v366_v14 = vld [vmem:[%s594_s0 + $0x28] sm:$0xff]  ;;  %v368_v15 = vld [vmem:[%s594_s0 + $0x38] sm:$0xff] }
   0x9   :  { %v378_v16 = vld [vmem:[%s597_s3] sm:$0xff]   ;;  %v410_v17 = vld [vmem:[%s597_s3 + $0x10] sm:$0xff]   ;;  %v409_v49 = vld [vmem:[%s597_s3 + $0x8] sm:$0xff]  }
   0xa   :  { %152 = vmatpush.bf16.msra.mxu0 %v374_v2  ;;  %422 = vmatpush.bf16.msra.mxu1 %v374_v2  ;;  %v555_v18 = vld [vmem:[%s596_s2] ss:$0 sm:$0xff]  ;;  %v379_v19 = vunpack.c.l.bf16 %v378_v16  ;;  %v387_v20 = vunpack.c.l.bf16 %v410_v17  ;;  %v414_v28 = vld [vmem:[%s597_s3 + $0x30] sm:$0xff]   ;;  %v380_v35 = vunpack.c.h.bf16 %v378_v16  ;;  %v388_v36 = vunpack.c.h.bf16 %v410_v17  ;;  %v411_v50 = vld [vmem:[%s597_s3 + $0x18] sm:$0xff]  }
   0xb   :  { %423 = vmatpush.bf16.msra.mxu2 %v374_v2  ;;  %424 = vmatpush.bf16.msra.mxu3 %v374_v2  ;;  %v412_v27 = vld [vmem:[%s597_s3 + $0x20] sm:$0xff]   ;;  %v403_v32 = vunpack.c.l.bf16 %v414_v28  ;;  %v404_v54 = vunpack.c.h.bf16 %v414_v28  ;;  %v383_v57 = vunpack.c.l.bf16 %v409_v49  ;;  %v391_v58 = vunpack.c.l.bf16 %v411_v50 }
   0xc   :  { %v395_v31 = vunpack.c.l.bf16 %v412_v27  ;;  %v396_v53 = vunpack.c.h.bf16 %v412_v27  ;;  %v392_v16 = vunpack.c.h.bf16 %v411_v50 }
   0xe   :  { %153 = vmatpush.bf16.msra.mxu0 %v373_v3  ;;  %425 = vmatpush.bf16.msra.mxu1 %v373_v3 }
   0xf   :  { %426 = vmatpush.bf16.msra.mxu2 %v373_v3  ;;  %427 = vmatpush.bf16.msra.mxu3 %v373_v3 }
  0x12   :  { %154 = vmatpush.bf16.msra.mxu0 %v372_v4  ;;  %428 = vmatpush.bf16.msra.mxu1 %v372_v4 }
  0x13   :  { %429 = vmatpush.bf16.msra.mxu2 %v372_v4  ;;  %430 = vmatpush.bf16.msra.mxu3 %v372_v4 }
  0x16   :  { %155 = vmatpush.bf16.msra.mxu0 %v371_v5  ;;  %431 = vmatpush.bf16.msra.mxu1 %v371_v5 }
  0x17   :  { %432 = vmatpush.bf16.msra.mxu2 %v371_v5  ;;  %433 = vmatpush.bf16.msra.mxu3 %v371_v5  ;;  %v413_v5 = vld [vmem:[%s597_s3 + $0x28] sm:$0xff]  }
  0x1a   :  { %156 = vmatpush.bf16.msra.mxu0 %v370_v6  ;;  %434 = vmatpush.bf16.msra.mxu1 %v370_v6 }
  0x1b   :  { %435 = vmatpush.bf16.msra.mxu2 %v370_v6  ;;  %436 = vmatpush.bf16.msra.mxu3 %v370_v6  ;;  %v415_v6 = vld [vmem:[%s597_s3 + $0x38] sm:$0xff]   ;;  %s470_s3 = smov [#allocation2]  }
  0x1c   :  { %s283_s10 = sshll.u32 %s470_s3, 4  ;;  %s284_s10 = int_to_ptr.vmem [resolvable:$true] %s283_s10 }
  0x1e   :  { %157 = vmatpush.bf16.msra.mxu0 %v369_v7  ;;  %437 = vmatpush.bf16.msra.mxu1 %v369_v7 }
  0x1f   :  { %438 = vmatpush.bf16.msra.mxu2 %v369_v7  ;;  %439 = vmatpush.bf16.msra.mxu3 %v369_v7 }
  0x21   :  { %158 = vmatmul.bf16.vlgmr.msra.gmra.mxu0 %v361_v8  ;;  %168 = vmatmul.bf16.vlgmr.msra.gmra.mxu1 %v363_v9 }
  0x22   :  { %178 = vmatmul.bf16.vlgmr.msra.gmra.mxu2 %v365_v10  ;;  %188 = vmatmul.bf16.vlgmr.msra.gmra.mxu3 %v367_v11  ;;  %v399_v11 = vunpack.c.l.bf16 %v413_v5 }
  0x31   :  { %163 = vmatmul.bf16.gmra.mxu0 %v362_v12  ;;  %173 = vmatmul.bf16.gmra.mxu1 %v364_v13  ;;  %v407_v12 = vunpack.c.l.bf16 %v415_v6 }
  0x32   :  { %183 = vmatmul.bf16.gmra.mxu2 %v366_v14  ;;  %193 = vmatmul.bf16.gmra.mxu3 %v368_v15  ;;  %v384_v15 = vunpack.c.h.bf16 %v409_v49 }
  0x9e   :  { %v159_v21 = vpop.f32.mrf.mxu0  ;;  %v169_v22 = vpop.f32.mrf.mxu1 }
  0x9f   :  { %v160_v23 = vadd.f32 %v555_v18, %v159_v21  ;;  %v170_v24 = vadd.f32 %v555_v18, %v169_v22 }
  0xa1   :  { %v231_v25 = vadd.f32 %v379_v19, %v160_v23  ;;  %v235_v26 = vadd.f32 %v387_v20, %v170_v24 }
  0xa3   :  { %v247_v29 = vmax.f32 %v231_v25, 0.0  ;;  %v251_v30 = vmax.f32 %v235_v26, 0.0 }
  0xa5   :  { %263 = vst [vmem:[#allocation2] sm:$0xff] %v247_v29  ;;  %v179_v33 = vpop.f32.mrf.mxu2  ;;  %v189_v34 = vpop.f32.mrf.mxu3 }
  0xa6   :  { %267 = vst [vmem:[#allocation2 + $0x20] sm:$0xff] %v251_v30  ;;  %v180_v37 = vadd.f32 %v555_v18, %v179_v33  ;;  %v190_v38 = vadd.f32 %v555_v18, %v189_v34  ;;  %v161_v39 = vpop.f32.mrf.mxu0  ;;  %v171_v40 = vpop.f32.mrf.mxu1  ;;  %v408_v33 = vunpack.c.h.bf16 %v415_v6 }
  0xa7   :  { %v162_v41 = vadd.f32 %v555_v18, %v161_v39  ;;  %v172_v42 = vadd.f32 %v555_v18, %v171_v40 }
  0xa8   :  { %v239_v43 = vadd.f32 %v395_v31, %v180_v37  ;;  %v243_v44 = vadd.f32 %v403_v32, %v190_v38  ;;  %v400_v32 = vunpack.c.h.bf16 %v413_v5 }
  0xa9   :  { %v232_v45 = vadd.f32 %v380_v35, %v162_v41  ;;  %v236_v46 = vadd.f32 %v388_v36, %v172_v42 }
  0xaa   :  { %v255_v47 = vmax.f32 %v239_v43, 0.0  ;;  %v259_v48 = vmax.f32 %v243_v44, 0.0 }
  0xab   :  { %v248_v51 = vmax.f32 %v232_v45, 0.0  ;;  %v252_v52 = vmax.f32 %v236_v46, 0.0 }
  0xac   :  { %271 = vst [vmem:[#allocation2 + $0x40] sm:$0xff] %v255_v47 }
  0xad   :  { %275 = vst [vmem:[#allocation2 + $0x60] sm:$0xff] %v259_v48  ;;  %v181_v55 = vpop.f32.mrf.mxu2  ;;  %v191_v56 = vpop.f32.mrf.mxu3 }
  0xae   :  { %264 = vst [vmem:[#allocation2 + $0x8] sm:$0xff] %v248_v51  ;;  %v182_v59 = vadd.f32 %v555_v18, %v181_v55  ;;  %v192_v60 = vadd.f32 %v555_v18, %v191_v56  ;;  %v164_v61 = vpop.f32.mrf.mxu0  ;;  %v174_v62 = vpop.f32.mrf.mxu1 }
  0xaf   :  { %268 = vst [vmem:[#allocation2 + $0x28] sm:$0xff] %v252_v52  ;;  %v165_v63 = vadd.f32 %v555_v18, %v164_v61  ;;  %v175_v0 = vadd.f32 %v555_v18, %v174_v62 }
  0xb0   :  { %v240_v1 = vadd.f32 %v396_v53, %v182_v59  ;;  %v244_v2 = vadd.f32 %v404_v54, %v192_v60 }
  0xb1   :  { %v233_v3 = vadd.f32 %v383_v57, %v165_v63  ;;  %v237_v4 = vadd.f32 %v391_v58, %v175_v0 }
  0xb2   :  { %v256_v7 = vmax.f32 %v240_v1, 0.0  ;;  %v260_v8 = vmax.f32 %v244_v2, 0.0 }
  0xb3   :  { %v249_v9 = vmax.f32 %v233_v3, 0.0  ;;  %v253_v10 = vmax.f32 %v237_v4, 0.0 }
  0xb4   :  { %272 = vst [vmem:[#allocation2 + $0x48] sm:$0xff] %v256_v7 }
  0xb5   :  { %276 = vst [vmem:[#allocation2 + $0x68] sm:$0xff] %v260_v8  ;;  %v184_v13 = vpop.f32.mrf.mxu2  ;;  %v194_v14 = vpop.f32.mrf.mxu3 }
  0xb6   :  { %265 = vst [vmem:[#allocation2 + $0x10] sm:$0xff] %v249_v9  ;;  %v185_v17 = vadd.f32 %v555_v18, %v184_v13  ;;  %v195_v19 = vadd.f32 %v555_v18, %v194_v14  ;;  %v166_v20 = vpop.f32.mrf.mxu0  ;;  %v176_v21 = vpop.f32.mrf.mxu1 }
  0xb7   :  { %269 = vst [vmem:[#allocation2 + $0x30] sm:$0xff] %v253_v10  ;;  %v167_v22 = vadd.f32 %v555_v18, %v166_v20  ;;  %v177_v23 = vadd.f32 %v555_v18, %v176_v21 }
  0xb8   :  { %v241_v24 = vadd.f32 %v399_v11, %v185_v17  ;;  %v245_v25 = vadd.f32 %v407_v12, %v195_v19 }
  0xb9   :  { %v234_v26 = vadd.f32 %v384_v15, %v167_v22  ;;  %v238_v27 = vadd.f32 %v392_v16, %v177_v23 }
  0xba   :  { %v257_v28 = vmax.f32 %v241_v24, 0.0  ;;  %v261_v29 = vmax.f32 %v245_v25, 0.0 }
  0xbb   :  { %v250_v30 = vmax.f32 %v234_v26, 0.0  ;;  %v254_v31 = vmax.f32 %v238_v27, 0.0 }
  0xbc   :  { %273 = vst [vmem:[#allocation2 + $0x50] sm:$0xff] %v257_v28 }
  0xbd   :  { %277 = vst [vmem:[#allocation2 + $0x70] sm:$0xff] %v261_v29  ;;  %v186_v34 = vpop.f32.mrf.mxu2  ;;  %v196_v35 = vpop.f32.mrf.mxu3 }
  0xbe   :  { %266 = vst [vmem:[#allocation2 + $0x18] sm:$0xff] %v250_v30  ;;  %v187_v36 = vadd.f32 %v555_v18, %v186_v34  ;;  %v197_v37 = vadd.f32 %v555_v18, %v196_v35 }
  0xbf   :  { %270 = vst [vmem:[#allocation2 + $0x38] sm:$0xff] %v254_v31 }
  0xc0   :  { %v242_v38 = vadd.f32 %v400_v32, %v187_v36  ;;  %v246_v39 = vadd.f32 %v408_v33, %v197_v37 }
  0xc2   :  { %v258_v40 = vmax.f32 %v242_v38, 0.0  ;;  %v262_v41 = vmax.f32 %v246_v39, 0.0 }
  0xc4   :  { %274 = vst [vmem:[#allocation2 + $0x58] sm:$0xff] %v258_v40 }
  0xc5   :  { %278 = vst [vmem:[#allocation2 + $0x78] sm:$0xff] %v262_v41 }
  0xc6   :  { %291 = dma.vmem_to_hbm [thread:$0]  %s284_s10, 2048, %s286_s1, [#allocation3], %s471_s13, %s471_s13, %s472_s14  }
  0xc7   :  { %468 = dma.done.wait [#allocation3], 2048  }
  0xc8   :  { %469 = vsyncadd [#allocation3], 4294965248 }
  0xc9   :  { %296 = vsyncpa [#allocation3], 1 }

// kernel: bottleneck_forward.3
= control target key start
LH: loop header
LB: loop body
LE: loop exit
PB: predicated region body
PF: predicated region fallthrough
CT: control target
= control target key end

     0   :  { %8 = vsyncpa [#allocation3], 0  ;;  %s535_s0 = inlined_call_operand.vmem [shape: bf16[128,64], index: 0, kind: input, shape index: {}]   ;;  %s536_s1 = inlined_call_operand.hbm [shape: bf16[64,128], index: 1, kind: input, shape index: {}]   ;;  %s537_s2 = inlined_call_operand.hbm [shape: f32[1,128], index: 2, kind: input, shape index: {}]   ;;  %s538_s3 = inlined_call_operand.vmem [shape: bf16[128,128], index: 3, kind: output, shape index: {}]  }
   0x1   :  { %s16_s14 = sshll.u32 %s536_s1, 4  ;;  %s17_s14 = int_to_ptr.hbm [resolvable:$true] %s16_s14 }
   0x2   :  { %9 = vsyncpa [#allocation5], 0  ;;  %s449_s15 = smov [#allocation2]   ;;  %s30_s19 = sshll.u32 %s537_s2, 4  ;;  %s31_s19 = int_to_ptr.hbm [resolvable:$true] %s30_s19 }
   0x3   :  { %s18_s16 = sshll.u32 %s449_s15, 4  ;;  %s450_s20 = smov 64   ;;  %s19_s16 = int_to_ptr.vmem [resolvable:$true] %s18_s16 }
   0x4   :  { %s451_s21 = smov 4   ;;  %s452_s22 = smov [#allocation4]  }
   0x5   :  { %24 = dma.hbm_to_vmem [thread:$0]  %s17_s14, 512, %s19_s16, [#allocation3], %s450_s20, %s450_s20, %s451_s21  }
   0x6   :  { %s32_s23 = sshll.u32 %s452_s22, 4  ;;  %s33_s23 = int_to_ptr.vmem [resolvable:$true] %s32_s23 }
   0x7   :  { %35 = dma.hbm_to_vmem [thread:$0]  %s31_s19, 16, %s33_s23, [#allocation5]  }
   0x8   :  { %445 = dma.done.wait [#allocation3], 512  }
   0x9   :  { %446 = vsyncadd [#allocation3], 4294966784 }
   0xa   :  { %447 = dma.done.wait [#allocation5], 16  }
   0xb   :  { %448 = vsyncadd [#allocation5], 4294967280  ;;  %v332_v0 = vld [vmem:[#allocation2 + $0x18] sm:$0xff]  ;;  %v331_v1 = vld [vmem:[#allocation2 + $0x10] sm:$0xff]  ;;  %vm137_vm0 = vcmask 523264  }
   0xc   :  { %166 = vmatpush.bf16.msra.mxu0 %v332_v0  ;;  %380 = vmatpush.bf16.msra.mxu1 %v332_v0  ;;  %v330_v2 = vld [vmem:[#allocation2 + $0x8] sm:$0xff]  ;;  %v329_v3 = vld [vmem:[#allocation2] sm:$0xff]  ;;  %v323_v5 = vld [vmem:[%s535_s0 + $0x10] sm:$0xff] }
   0xd   :  { %381 = vmatpush.bf16.msra.mxu2 %v332_v0  ;;  %382 = vmatpush.bf16.msra.mxu3 %v332_v0  ;;  %v321_v4 = vld [vmem:[%s535_s0] sm:$0xff]  ;;  %v327_v7 = vld [vmem:[%s535_s0 + $0x30] sm:$0xff]  ;;  %v322_v8 = vld [vmem:[%s535_s0 + $0x8] sm:$0xff] }
   0xe   :  { %v325_v6 = vld [vmem:[%s535_s0 + $0x20] sm:$0xff]  ;;  %v324_v9 = vld [vmem:[%s535_s0 + $0x18] sm:$0xff]  ;;  %v326_v10 = vld [vmem:[%s535_s0 + $0x28] sm:$0xff] }
   0xf   :  { %v328_v11 = vld [vmem:[%s535_s0 + $0x38] sm:$0xff]  ;;  %v396_v14 = vld [vmem:[#allocation4] ss:$0 sm:$0xff] }
  0x10   :  { %167 = vmatpush.bf16.msra.mxu0 %v331_v1  ;;  %383 = vmatpush.bf16.msra.mxu1 %v331_v1 }
  0x11   :  { %384 = vmatpush.bf16.msra.mxu2 %v331_v1  ;;  %385 = vmatpush.bf16.msra.mxu3 %v331_v1 }
  0x14   :  { %168 = vmatpush.bf16.msra.mxu0 %v330_v2  ;;  %386 = vmatpush.bf16.msra.mxu1 %v330_v2 }
  0x15   :  { %387 = vmatpush.bf16.msra.mxu2 %v330_v2  ;;  %388 = vmatpush.bf16.msra.mxu3 %v330_v2 }
  0x18   :  { %169 = vmatpush.bf16.msra.mxu0 %v329_v3  ;;  %389 = vmatpush.bf16.msra.mxu1 %v329_v3 }
  0x19   :  { %390 = vmatpush.bf16.msra.mxu2 %v329_v3  ;;  %391 = vmatpush.bf16.msra.mxu3 %v329_v3 }
  0x1b   :  { %313 = vmatmul.msk.bf16.vlgmr.msra.gmra.mxu0 %vm137_vm0, %v321_v4  ;;  %315 = vmatmul.msk.bf16.vlgmr.msra.gmra.mxu1 %vm137_vm0, %v323_v5 }
  0x1c   :  { %317 = vmatmul.msk.bf16.vlgmr.msra.gmra.mxu2 %vm137_vm0, %v325_v6  ;;  %319 = vmatmul.msk.bf16.vlgmr.msra.gmra.mxu3 %vm137_vm0, %v327_v7 }
  0x2b   :  { %314 = vmatmul.msk.bf16.gmra.mxu0 %vm137_vm0, %v322_v8  ;;  %316 = vmatmul.msk.bf16.gmra.mxu1 %vm137_vm0, %v324_v9 }
  0x2c   :  { %318 = vmatmul.msk.bf16.gmra.mxu2 %vm137_vm0, %v326_v10  ;;  %320 = vmatmul.msk.bf16.gmra.mxu3 %vm137_vm0, %v328_v11 }
  0x98   :  { %v171_v12 = vpop.f32.mrf.mxu0  ;;  %v181_v13 = vpop.f32.mrf.mxu1 }
  0x99   :  { %v172_v15 = vadd.f32 %v396_v14, %v171_v12  ;;  %v182_v16 = vadd.f32 %v396_v14, %v181_v13 }
  0x9b   :  { %v211_v23 = vmax.f32 %v172_v15, 0.0  ;;  %v215_v24 = vmax.f32 %v182_v16, 0.0 }
  0x9f   :  { %v191_v17 = vpop.f32.mrf.mxu2  ;;  %v201_v18 = vpop.f32.mrf.mxu3 }
  0xa0   :  { %v173_v19 = vpop.f32.mrf.mxu0  ;;  %v183_v20 = vpop.f32.mrf.mxu1  ;;  %v192_v29 = vadd.f32 %v396_v14, %v191_v17  ;;  %v202_v30 = vadd.f32 %v396_v14, %v201_v18 }
  0xa1   :  { %v174_v21 = vadd.f32 %v396_v14, %v173_v19  ;;  %v184_v22 = vadd.f32 %v396_v14, %v183_v20 }
  0xa2   :  { %v219_v37 = vmax.f32 %v192_v29, 0.0  ;;  %v223_v38 = vmax.f32 %v202_v30, 0.0 }
  0xa3   :  { %v212_v25 = vmax.f32 %v174_v21, 0.0  ;;  %v216_v26 = vmax.f32 %v184_v22, 0.0 }
  0xa5   :  { %v336_v27 = vpack.c.bf16 %v212_v25, %v211_v23  ;;  %v346_v28 = vpack.c.bf16 %v216_v26, %v215_v24 }
  0xa7   :  { %337 = vst [vmem:[%s538_s3] sm:$0xff] %v336_v27   ;;  %v193_v31 = vpop.f32.mrf.mxu2  ;;  %v203_v32 = vpop.f32.mrf.mxu3 }
  0xa8   :  { %374 = vst [vmem:[%s538_s3 + $0x10] sm:$0xff] %v346_v28   ;;  %v194_v33 = vadd.f32 %v396_v14, %v193_v31  ;;  %v204_v34 = vadd.f32 %v396_v14, %v203_v32  ;;  %v176_v35 = vpop.f32.mrf.mxu0  ;;  %v186_v36 = vpop.f32.mrf.mxu1 }
  0xa9   :  { %v177_v43 = vadd.f32 %v396_v14, %v176_v35  ;;  %v187_v44 = vadd.f32 %v396_v14, %v186_v36 }
  0xaa   :  { %v220_v39 = vmax.f32 %v194_v33, 0.0  ;;  %v224_v40 = vmax.f32 %v204_v34, 0.0 }
  0xab   :  { %v213_v51 = vmax.f32 %v177_v43, 0.0  ;;  %v217_v52 = vmax.f32 %v187_v44, 0.0 }
  0xac   :  { %v356_v41 = vpack.c.bf16 %v220_v39, %v219_v37  ;;  %v366_v42 = vpack.c.bf16 %v224_v40, %v223_v38 }
  0xae   :  { %376 = vst [vmem:[%s538_s3 + $0x20] sm:$0xff] %v356_v41  }
  0xaf   :  { %378 = vst [vmem:[%s538_s3 + $0x30] sm:$0xff] %v366_v42   ;;  %v196_v45 = vpop.f32.mrf.mxu2  ;;  %v206_v46 = vpop.f32.mrf.mxu3 }
  0xb0   :  { %v178_v47 = vpop.f32.mrf.mxu0  ;;  %v188_v48 = vpop.f32.mrf.mxu1  ;;  %v197_v57 = vadd.f32 %v396_v14, %v196_v45  ;;  %v207_v58 = vadd.f32 %v396_v14, %v206_v46 }
  0xb1   :  { %v179_v49 = vadd.f32 %v396_v14, %v178_v47  ;;  %v189_v50 = vadd.f32 %v396_v14, %v188_v48 }
  0xb2   :  { %v221_v63 = vmax.f32 %v197_v57, 0.0  ;;  %v225_v0 = vmax.f32 %v207_v58, 0.0 }
  0xb3   :  { %v214_v53 = vmax.f32 %v179_v49, 0.0  ;;  %v218_v54 = vmax.f32 %v189_v50, 0.0 }
  0xb5   :  { %v341_v55 = vpack.c.bf16 %v214_v53, %v213_v51  ;;  %v351_v56 = vpack.c.bf16 %v218_v54, %v217_v52 }
  0xb7   :  { %373 = vst [vmem:[%s538_s3 + $0x8] sm:$0xff] %v341_v55   ;;  %v198_v59 = vpop.f32.mrf.mxu2  ;;  %v208_v60 = vpop.f32.mrf.mxu3 }
  0xb8   :  { %375 = vst [vmem:[%s538_s3 + $0x18] sm:$0xff] %v351_v56   ;;  %v199_v61 = vadd.f32 %v396_v14, %v198_v59  ;;  %v209_v62 = vadd.f32 %v396_v14, %v208_v60 }
  0xba   :  { %v222_v1 = vmax.f32 %v199_v61, 0.0  ;;  %v226_v2 = vmax.f32 %v209_v62, 0.0 }
  0xbc   :  { %v361_v3 = vpack.c.bf16 %v222_v1, %v221_v63  ;;  %v371_v4 = vpack.c.bf16 %v226_v2, %v225_v0 }
  0xbe   :  { %377 = vst [vmem:[%s538_s3 + $0x28] sm:$0xff] %v361_v3  }
  0xbf   :  { %379 = vst [vmem:[%s538_s3 + $0x38] sm:$0xff] %v371_v4  }
  0xc0   :  { %263 = vsyncpa [#allocation3], 1 }
  0xc1   :  { %264 = vsyncpa [#allocation5], 1 }

// kernel: bottleneck_forward.4
= control target key start
LH: loop header
LB: loop body
LE: loop exit
PB: predicated region body
PF: predicated region fallthrough
CT: control target
= control target key end

     0   :  { %s2059_s12 = smov 0   ;;  %s2624_s0 = inlined_call_operand.vmem [shape: bf16[2,10,10,128], index: 0, kind: input, shape index: {}]   ;;  %s2625_s1 = inlined_call_operand.vmem [shape: bf16[9,128,128], index: 1, kind: input, shape index: {}]   ;;  %s2626_s2 = inlined_call_operand.vmem [shape: f32[1,128], index: 2, kind: input, shape index: {}]   ;;  %s2627_s3 = inlined_call_operand.vmem [shape: bf16[2,8,8,128], index: 3, kind: output, shape index: {}]  }
   0x1 LB: > { %s1473_s13 = sadd.s32 4294967295, %s2037_s12   ;;  %p1477_p0 = scmp.ge.s32.totalorder %s2037_s12, 1  ;;  %s2037_s12 = sphi %s2059_s12, %s13_s12  }
   0x2   : > { %p137_p1 = scmp.lt.s32.totalorder %s2037_s12, 3 }
   0x4   : > { %p138_p2 = pnand %p1477_p0, %p137_p1 }
   0x5   : > { %p161_p3 = scmp.lt.s32.totalorder (!%p138_p2), %s1473_s13, 1 }
   0x6   : > { %141 = sbr.rel (%p138_p2) target bundleno = 336 (0x150), region = 32 }
   0xb   : > { %v1925_v0 = vld [vmem:[%s2625_s1 + $0x78] sm:$0xff]  ;;  %v1924_v2 = vld [vmem:[%s2625_s1 + $0x70] sm:$0xff]  ;;  %s2633_s13 = smov (!%p161_p3, %s1473_s13), 1  ;;  %v1923_v5 = vld [vmem:[%s2625_s1 + $0x68] sm:$0xff]  ;;  %vm207_vm0 = vsmask.f32 3328 }
   0xc   : > { %v1933_v1 = vld [vmem:[%s2625_s1 + $0xb8] sm:$0xff]  ;;  %2005 = vmatpush.bf16.msra.mxu1 %v1925_v0  ;;  %403 = vmatpush.bf16.msra.mxu0 %v1925_v0  ;;  %v1932_v3 = vld [vmem:[%s2625_s1 + $0xb0] sm:$0xff]  ;;  %s2021_s24 = smul.u32 80, %s2633_s13  ;;  %v1931_v7 = vld [vmem:[%s2625_s1 + $0xa8] sm:$0xff]  ;;  %vm208_vm1 = vsmask.f32 7440 }
   0xd   : > { %657 = vmatpush.bf16.msra.mxu2 %v1933_v1  ;;  %v1941_v4 = vld [vmem:[%s2625_s1 + $0xf8] sm:$0xff]  ;;  %v1940_v6 = vld [vmem:[%s2625_s1 + $0xf0] sm:$0xff]  ;;  %vm541_vm2 = vcmask 1042432   ;;  %v1922_v11 = vld [vmem:[%s2625_s1 + $0x60] sm:$0xff]  ;;  %vm542_vm3 = vcmask 1046532   ;;  %s1909_s18 = sshll.u32 %s2633_s13, 5 }
   0xe   : > { %769 = vmatpush.bf16.msra.mxu3 %v1941_v4  ;;  %s2097_s6 = scalar_lea.vmem %s2624_s0, %s2021_s24  ;;  %v1930_v17 = vld [vmem:[%s2625_s1 + $0xa0] sm:$0xff]  ;;  %v1939_v18 = vld [vmem:[%s2625_s1 + $0xe8] sm:$0xff]  ;;  %v1921_v39 = vld [vmem:[%s2625_s1 + $0x58] sm:$0xff]  ;;  %s2600_s21 = scalar_lea.vmem %s2627_s3, %s1909_s18 }
   0xf   : > { %v2100_v8 = vld [vmem:[%s2097_s6 + $0x20] sm:$0xf]  ;;  %v2103_v9 = vld [vmem:[%s2097_s6 + $0x24] sm:$0x1]  ;;  %v2106_v10 = vld [vmem:[%s2097_s6 + $0x28] sm:$0xf] }
  0x10   : > { %2006 = vmatpush.bf16.msra.mxu1 %v1924_v2  ;;  %404 = vmatpush.bf16.msra.mxu0 %v1924_v2  ;;  %v2112_v12 = vld [vmem:[%s2097_s6 + $0x2c] sm:$0x1]  ;;  %v267_v13 = vshrl.u32 %v2100_v8, 16  ;;  %v270_v14 = vshll.u32 %v2100_v8, 16  ;;  %v276_v15 = vshll.u32 %v2103_v9, 16  ;;  %v281_v16 = vshrl.u32 %v2106_v10, 16  ;;  %vm2149_vm4 = vmor %vm207_vm0, %vm208_vm1 }
  0x11   : > { %658 = vmatpush.bf16.msra.mxu2 %v1932_v3  ;;  %v284_v19 = vshll.u32 %v2106_v10, 16  ;;  %v2126_v20 = vld [vmem:[%s2097_s6] sm:$0xf]  ;;  %v290_v24 = vshll.u32 %v2112_v12, 16  ;;  %v172_v25 = vld [vmem:[%s2097_s6 + $0x4] sm:$0x1]  ;;  %vm2155_vm5 = vmor %vm541_vm2, %vm542_vm3 }
  0x12   : > { %770 = vmatpush.bf16.msra.mxu3 %v1940_v6  ;;  %v269_v21 = vrot.slane %v267_v13, 4  ;;  %v272_v22 = vrot.slane %v270_v14, 5  ;;  %v283_v23 = vrot.slane %v281_v16, 4  ;;  %v278_v26 = vrot.slane %v276_v15, 5  ;;  %v2131_v28 = vld [vmem:[%s2097_s6 + $0x8] sm:$0xf] }
  0x13   : > { %v286_v27 = vrot.slane %v284_v19, 5  ;;  %v174_v29 = vld [vmem:[%s2097_s6 + $0xc] sm:$0x1]  ;;  %v211_v31 = vshrl.u32 %v2126_v20, 16  ;;  %v214_v32 = vshll.u32 %v2126_v20, 16  ;;  %v220_v33 = vshll.u32 %v172_v25, 16 }
  0x14   : > { %2007 = vmatpush.bf16.msra.mxu1 %v1923_v5  ;;  %405 = vmatpush.bf16.msra.mxu0 %v1923_v5  ;;  %v273_v30 = vor.u32 %v272_v22, %v269_v21  ;;  %v1938_v35 = vld [vmem:[%s2625_s1 + $0xe0] sm:$0xff]  ;;  %v225_v36 = vshrl.u32 %v2131_v28, 16  ;;  %v228_v37 = vshll.u32 %v2131_v28, 16  ;;  %v234_v38 = vshll.u32 %v174_v29, 16  ;;  %v1929_v44 = vld [vmem:[%s2625_s1 + $0x98] sm:$0xff]  ;;  %v1920_v59 = vld [vmem:[%s2625_s1 + $0x50] sm:$0xff] }
  0x15   : > { %659 = vmatpush.bf16.msra.mxu2 %v1931_v7  ;;  %v287_v34 = vor.u32 %v286_v27, %v283_v23  ;;  %v292_v41 = vrot.slane %v290_v24, 5  ;;  %v213_v42 = vrot.slane %v211_v31, 4  ;;  %v216_v43 = vrot.slane %v214_v32, 5  ;;  %v1937_v56 = vld [vmem:[%s2625_s1 + $0xd8] sm:$0xff]  ;;  %v2165_v58 = vld [vmem:[%s2097_s6 + $0x30] sm:$0xf] }
  0x16   : > { %771 = vmatpush.bf16.msra.mxu3 %v1939_v18  ;;  %v274_v40 = vrot.slane %v273_v30, 4  ;;  %v227_v47 = vrot.slane %v225_v36, 4  ;;  %v230_v48 = vrot.slane %v228_v37, 5  ;;  %v222_v50 = vrot.slane %v220_v33, 5  ;;  %v1928_v0 = vld [vmem:[%s2625_s1 + $0x90] sm:$0xff]  ;;  %v1927_v18 = vld [vmem:[%s2625_s1 + $0x88] sm:$0xff] }
  0x17   : > { %v288_v46 = vrot.slane %v287_v34, 4  ;;  %v217_v49 = vor.u32 %v216_v43, %v213_v42  ;;  %v1561_v52 = vrot.slane %v2126_v20, 9  ;;  %v546_v53 = vrot.slane %v172_v25, 5  ;;  %v2180_v3 = vld [vmem:[%s2097_s6 + $0x38] sm:$0xf]  ;;  %v1936_v16 = vld [vmem:[%s2625_s1 + $0xd0] sm:$0xff] }
  0x18   : > { %2008 = vmatpush.bf16.msra.mxu1 %v1922_v11  ;;  %406 = vmatpush.bf16.msra.mxu0 %v1922_v11  ;;  %v231_v54 = vor.u32 %v230_v48, %v227_v47  ;;  %v236_v55 = vrot.slane %v234_v38, 5  ;;  %v1562_v57 = vrot.slane %v2131_v28, 9  ;;  %v279_v60 = vsel %vm2149_vm4, %v274_v40, %v278_v26  ;;  %v2191_v11 = vld [vmem:[%s2097_s6 + $0x10] sm:$0xf]  ;;  %v2215_v25 = vld [vmem:[%s2097_s6 + $0x34] sm:$0x1] }
  0x19   : > { %660 = vmatpush.bf16.msra.mxu2 %v1930_v17  ;;  %v293_v61 = vsel %vm2149_vm4, %v288_v46, %v292_v41  ;;  %v218_v62 = vrot.slane %v217_v49, 4  ;;  %v550_v63 = vrot.slane %v174_v29, 5  ;;  %v547_v2 = vsel %vm2155_vm5, %v1561_v52, %v546_v53  ;;  %v1919_v17 = vld [vmem:[%s2625_s1 + $0x48] sm:$0xff]  ;;  %v2219_v27 = vld [vmem:[%s2097_s6 + $0x18] sm:$0xf]  ;;  %v1918_v34 = vld [vmem:[%s2625_s1 + $0x40] sm:$0xff] }
  0x1a   : > { %772 = vmatpush.bf16.msra.mxu3 %v1938_v35  ;;  %v232_v1 = vrot.slane %v231_v54, 4  ;;  %v295_v6 = vshrl.u32 %v2165_v58, 16  ;;  %v298_v7 = vshll.u32 %v2165_v58, 16  ;;  %v2193_v13 = vunpack.c.l.b16 %v279_v60  ;;  %v2223_v30 = vld [vmem:[%s2097_s6 + $0x3c] sm:$0x1]  ;;  %v1935_v36 = vld [vmem:[%s2625_s1 + $0xc8] sm:$0xff] }
  0x1b   : > { %v223_v4 = vsel %vm2149_vm4, %v218_v62, %v222_v50  ;;  %v2186_v5 = vsel %vm2155_vm5, %v1562_v57, %v550_v63  ;;  %v2195_v14 = vunpack.c.l.b16 %v293_v61  ;;  %v593_v21 = vunpack.c.l.b16 %v547_v2  ;;  %v2238_v40 = vld [vmem:[%s2097_s6 + $0x1c] sm:$0x1]  ;;  %v1926_v47 = vld [vmem:[%s2625_s1 + $0x80] sm:$0xff] }
  0x1c   : > { %2009 = vmatpush.bf16.msra.mxu1 %v1921_v39  ;;  %407 = vmatpush.bf16.msra.mxu0 %v1921_v39  ;;  %v237_v15 = vsel %vm2149_vm4, %v232_v1, %v236_v55  ;;  %v2208_v19 = vunpack.c.l.b16 %v223_v4  ;;  %v309_v22 = vshrl.u32 %v2180_v3, 16  ;;  %v594_v24 = vunpack.c.l.b16 %v2186_v5  ;;  %v176_v39 = vld [vmem:[%s2097_s6 + $0x14] sm:$0x1]  ;;  %v1917_v46 = vld [vmem:[%s2625_s1 + $0x38] sm:$0xff] }
  0x1d   : > { %661 = vmatpush.bf16.msra.mxu2 %v1929_v44  ;;  %v2211_v23 = vunpack.c.l.b16 %v237_v15  ;;  %v312_v26 = vshll.u32 %v2180_v3, 16  ;;  %v239_v29 = vshrl.u32 %v2191_v11, 16  ;;  %v297_v31 = vrot.slane %v295_v6, 4  ;;  %v1949_v53 = vld [vmem:[%s2625_s1 + $0x138] sm:$0xff] }
  0x1e   : > { %773 = vmatpush.bf16.msra.mxu3 %v1937_v56  ;;  %v300_v32 = vrot.slane %v298_v7, 5  ;;  %v242_v33 = vshll.u32 %v2191_v11, 16  ;;  %v2231_v35 = vpack.c.b16 %v2195_v14, %v2193_v13  ;;  %v311_v37 = vrot.slane %v309_v22, 4  ;;  %v1965_v55 = vld [vmem:[%s2625_s1 + $0x1b8] sm:$0xff]  ;;  %v1916_v7 = vld [vmem:[%s2625_s1 + $0x30] sm:$0xff] }
  0x1f   : > { %v314_v38 = vrot.slane %v312_v26, 5  ;;  %v241_v41 = vrot.slane %v239_v29, 4  ;;  %v253_v43 = vshrl.u32 %v2219_v27, 16  ;;  %v256_v44 = vshll.u32 %v2219_v27, 16  ;;  %v1973_v15 = vld [vmem:[%s2625_s1 + $0x1f8] sm:$0xff] }
  0x20   : > { %2010 = vmatpush.bf16.msra.mxu1 %v1920_v59  ;;  %408 = vmatpush.bf16.msra.mxu0 %v1920_v59  ;;  %v244_v42 = vrot.slane %v242_v33, 5  ;;  %v347_v48 = vpack.c.b16 %v2211_v23, %v2208_v19  ;;  %v601_v49 = vpack.c.b16 %v594_v24, %v593_v21  ;;  %v304_v50 = vshll.u32 %v2215_v25, 16  ;;  %v1964_v21 = vld [vmem:[%s2625_s1 + $0x1b0] sm:$0xff] }
  0x21   : > { %662 = vmatpush.bf16.msra.mxu2 %v1928_v0  ;;  %v318_v52 = vshll.u32 %v2223_v30, 16  ;;  %v301_v54 = vor.u32 %v300_v32, %v297_v31  ;;  %v248_v56 = vshll.u32 %v176_v39, 16  ;;  %v255_v57 = vrot.slane %v253_v43, 4  ;;  %v1934_v0 = vld [vmem:[%s2625_s1 + $0xc0] sm:$0xff]  ;;  %v1947_v43 = vld [vmem:[%s2625_s1 + $0x128] sm:$0xff] }
  0x22   : > { %774 = vmatpush.bf16.msra.mxu3 %v1936_v16  ;;  %v258_v59 = vrot.slane %v256_v44, 5  ;;  %v315_v60 = vor.u32 %v314_v38, %v311_v37  ;;  %v262_v61 = vshll.u32 %v2238_v40, 16  ;;  %v441_v62 = vunpack.c.l.b16 %v2131_v28  ;;  %v1948_v16 = vld [vmem:[%s2625_s1 + $0x130] sm:$0xff]  ;;  %v1915_v37 = vld [vmem:[%s2625_s1 + $0x28] sm:$0xff] }
  0x23   : > { %v442_v63 = vunpack.c.l.b16 %v2191_v11  ;;  %v245_v1 = vor.u32 %v244_v42, %v241_v41  ;;  %v1563_v4 = vrot.slane %v2191_v11, 9  ;;  %v554_v6 = vrot.slane %v176_v39, 5  ;;  %v1972_v42 = vld [vmem:[%s2625_s1 + $0x1f0] sm:$0xff]  ;;  %v1963_v44 = vld [vmem:[%s2625_s1 + $0x1a8] sm:$0xff] }
  0x24   : > { %2011 = vmatpush.bf16.msra.mxu1 %v1919_v17  ;;  %409 = vmatpush.bf16.msra.mxu0 %v1919_v17  ;;  %v259_v2 = vor.u32 %v258_v59, %v255_v57  ;;  %v306_v17 = vrot.slane %v304_v50, 5  ;;  %v302_v22 = vrot.slane %v301_v54, 4  ;;  %v250_v26 = vrot.slane %v248_v56, 5  ;;  %v1946_v50 = vld [vmem:[%s2625_s1 + $0x120] sm:$0xff]  ;;  %v1913_v59 = vld [vmem:[%s2625_s1 + $0x18] sm:$0xff]  ;;  %v1955_v28 = vld [vmem:[%s2625_s1 + $0x168] sm:$0xff] }
  0x25   : > { %663 = vmatpush.bf16.msra.mxu2 %v1927_v18  ;;  %v320_v18 = vrot.slane %v318_v52, 5  ;;  %v555_v19 = vsel %vm2155_vm5, %v1563_v4, %v554_v6  ;;  %v713_v29 = vpack.c.b16 %v442_v63, %v441_v62  ;;  %v316_v32 = vrot.slane %v315_v60, 4  ;;  %v1962_v52 = vld [vmem:[%s2625_s1 + $0x1a0] sm:$0xff]  ;;  %v1945_v60 = vld [vmem:[%s2625_s1 + $0x118] sm:$0xff]  ;;  %v1912_v6 = vld [vmem:[%s2625_s1 + $0x10] sm:$0xff] }
  0x26   : > { %775 = vmatpush.bf16.msra.mxu3 %v1935_v36  ;;  %v595_v31 = vunpack.c.l.b16 %v555_v19  ;;  %v246_v33 = vrot.slane %v245_v1, 4  ;;  %v264_v36 = vrot.slane %v262_v61, 5  ;;  %v1564_v38 = vrot.slane %v2219_v27, 9 }
  0x27   : > { %v558_v39 = vrot.slane %v2238_v40, 5  ;;  %v307_v5 = vsel %vm2149_vm4, %v302_v22, %v306_v17  ;;  %v443_v1 = vunpack.c.l.b16 %v2219_v27  ;;  %v1970_v17 = vld [vmem:[%s2625_s1 + $0x1e0] sm:$0xff]  ;;  %v1565_v19 = vrot.slane %v2100_v8, 9  ;;  %v1977_v27 = vld [vmem:[%s2625_s1 + $0x218] sm:$0xff] }
  0x28   : > { %2012 = vmatpush.bf16.msra.mxu1 %v1918_v34  ;;  %410 = vmatpush.bf16.msra.mxu0 %v1918_v34  ;;  %v260_v34 = vrot.slane %v259_v2, 4  ;;  %v2293_v41 = vpack.c.b16 %v595_v31, %v594_v24  ;;  %v321_v24 = vsel %vm2149_vm4, %v316_v32, %v320_v18  ;;  %v251_v40 = vsel %vm2149_vm4, %v246_v33, %v250_v26  ;;  %v1911_v18 = vld [vmem:[%s2625_s1 + $0x8] sm:$0xff]  ;;  %v1969_v32 = vld [vmem:[%s2625_s1 + $0x1d8] sm:$0xff] }
  0x29   : > { %664 = vmatpush.bf16.msra.mxu2 %v1926_v47  ;;  %v1914_v47 = vld [vmem:[%s2625_s1 + $0x20] sm:$0xff]  ;;  %v2330_v54 = vunpack.c.l.b16 %v321_v24  ;;  %v444_v2 = vunpack.c.l.b16 %v2100_v8  ;;  %v1566_v22 = vrot.slane %v2106_v10, 9  ;;  %v566_v26 = vrot.slane %v2112_v12, 5 }
  0x2a   : > { %776 = vmatpush.bf16.msra.mxu3 %v1934_v0  ;;  %v446_v24 = vunpack.c.l.b16 %v2165_v58 }
  0x2b   : > { %421 = vmatmul.bf16.vlgmr.msra.gmra.mxu1 %v2231_v35  ;;  %411 = vmatmul.bf16.vlgmr.msra.gmra.mxu0 %v347_v48  ;;  %v2317_v48 = vsel %vm2155_vm5, %v1564_v38, %v558_v39  ;;  %v2401_v33 = vsel %vm2155_vm5, %v1566_v22, %v566_v26  ;;  %v1981_v38 = vld [vmem:[%s2625_s1 + $0x238] sm:$0xff]  ;;  %v449_v22 = vpack.c.b16 %v443_v1, %v442_v63  ;;  %v1976_v63 = vld [vmem:[%s2625_s1 + $0x210] sm:$0xff] }
  0x2c   : > { %504 = vmatpush.bf16.msrb.mxu1 %v1917_v46  ;;  %894 = vmatpush.bf16.msrb.mxu0 %v1949_v53  ;;  %v265_v46 = vsel %vm2149_vm4, %v260_v34, %v264_v36  ;;  %v2328_v53 = vunpack.c.l.b16 %v307_v5  ;;  %v596_v57 = vunpack.c.l.b16 %v2317_v48  ;;  %v1957_v34 = vld [vmem:[%s2625_s1 + $0x178] sm:$0xff]  ;;  %v1942_v36 = vld [vmem:[%s2625_s1 + $0x100] sm:$0xff]  ;;  %v445_v5 = vunpack.c.l.b16 %v2106_v10  ;;  %v189_v48 = vld [vmem:[%s2097_s6 + $0x48] sm:$0xf] }
  0x2d   : > { %1116 = vmatpush.bf16.msrb.mxu2 %v1965_v55  ;;  %777 = vmatmul.bf16.vlgmr.msra.gmra.mxu3 %v713_v29  ;;  %v2332_v55 = vunpack.c.l.b16 %v251_v40  ;;  %v2334_v56 = vunpack.c.l.b16 %v265_v46  ;;  %v1960_v29 = vld [vmem:[%s2625_s1 + $0x190] sm:$0xff] }
  0x2e   : > { %665 = vmatmul.bf16.vlgmr.msra.gmra.mxu2 %v601_v49  ;;  %1235 = vmatpush.bf16.msrb.mxu3 %v1973_v15  ;;  %v1971_v49 = vld [vmem:[%s2625_s1 + $0x1e8] sm:$0xff]  ;;  %v2345_v61 = vpack.c.b16 %v2330_v54, %v2328_v53  ;;  %v2355_v4 = vpack.c.b16 %v596_v57, %v595_v31  ;;  %v714_v15 = vpack.c.b16 %v444_v2, %v443_v1  ;;  %v1980_v46 = vld [vmem:[%s2625_s1 + $0x230] sm:$0xff] }
  0x2f   : > { %v2349_v0 = vpack.c.b16 %v2334_v56, %v2332_v55  ;;  %v1943_v31 = vld [vmem:[%s2625_s1 + $0x108] sm:$0xff]  ;;  %v839_v26 = vpack.c.b16 %v2193_v13, %v2334_v56  ;;  %v1950_v56 = vld [vmem:[%s2625_s1 + $0x140] sm:$0xff] }
  0x30   : > { %505 = vmatpush.bf16.msrb.mxu1 %v1916_v7  ;;  %895 = vmatpush.bf16.msrb.mxu0 %v1948_v16  ;;  %v1944_v7 = vld [vmem:[%s2625_s1 + $0x110] sm:$0xff]  ;;  %v1961_v16 = vld [vmem:[%s2625_s1 + $0x198] sm:$0xff]  ;;  %v1951_v13 = vld [vmem:[%s2625_s1 + $0x148] sm:$0xff] }
  0x31   : > { %1117 = vmatpush.bf16.msrb.mxu2 %v1964_v21  ;;  %v562_v21 = vrot.slane %v2103_v9, 5  ;;  %v1910_v9 = vld [vmem:[%s2625_s1] sm:$0xff] }
  0x32   : > { %1236 = vmatpush.bf16.msrb.mxu3 %v1972_v42  ;;  %v598_v42 = vunpack.c.l.b16 %v2401_v33 }
  0x33   : > { %v2397_v12 = vsel %vm2155_vm5, %v1565_v19, %v562_v21  ;;  %v2480_v19 = vld [vmem:[%s2097_s6 + $0x40] sm:$0xf]  ;;  %v1952_v21 = vld [vmem:[%s2625_s1 + $0x150] sm:$0xff] }
  0x34   : > { %506 = vmatpush.bf16.msrb.mxu1 %v1915_v37  ;;  %896 = vmatpush.bf16.msrb.mxu0 %v1947_v43  ;;  %v440_v37 = vunpack.c.l.b16 %v2126_v20  ;;  %v597_v39 = vunpack.c.l.b16 %v2397_v12  ;;  %v1956_v43 = vld [vmem:[%s2625_s1 + $0x170] sm:$0xff]  ;;  %v838_v20 = vpack.c.b16 %v2332_v55, %v2211_v23  ;;  %v1959_v23 = vld [vmem:[%s2625_s1 + $0x188] sm:$0xff]  ;;  %v1568_v55 = vrot.slane %v2180_v3, 9 }
  0x35   : > { %1118 = vmatpush.bf16.msrb.mxu2 %v1963_v44  ;;  %v807_v1 = vshrl.u32 %v2480_v19, 16  ;;  %v1157_v12 = vshll.u32 %v189_v48, 16 }
  0x36   : > { %1237 = vmatpush.bf16.msrb.mxu3 %v1971_v49  ;;  %v448_v44 = vpack.c.b16 %v441_v62, %v440_v37  ;;  %v2428_v40 = vpack.c.b16 %v598_v42, %v597_v39  ;;  %v715_v62 = vpack.c.b16 %v446_v24, %v445_v5  ;;  %v1979_v49 = vld [vmem:[%s2625_s1 + $0x228] sm:$0xff]  ;;  %v955_v8 = vpack.c.b16 %v597_v39, %v596_v57 }
  0x37   : > { %v1154_v57 = vshrl.u32 %v189_v48, 16 }
  0x38   : > { %507 = vmatpush.bf16.msrb.mxu1 %v1914_v47  ;;  %897 = vmatpush.bf16.msrb.mxu0 %v1946_v50  ;;  %v1968_v47 = vld [vmem:[%s2625_s1 + $0x1d0] sm:$0xff]  ;;  %v1567_v50 = vrot.slane %v2165_v58, 9 }
  0x39   : > { %1119 = vmatpush.bf16.msrb.mxu2 %v1962_v52  ;;  %v570_v52 = vrot.slane %v2215_v25, 5  ;;  %v1967_v25 = vld [vmem:[%s2625_s1 + $0x1c8] sm:$0xff]  ;;  %v1156_v39 = vrot.slane %v1154_v57, 4 }
  0x3a   : > { %1238 = vmatpush.bf16.msrb.mxu3 %v1970_v17 }
  0x3b   : > { %426 = vmatmul.bf16.gmra.mxu1 %v2345_v61  ;;  %416 = vmatmul.bf16.gmra.mxu0 %v2349_v0 }
  0x3c   : > { %508 = vmatpush.bf16.msrb.mxu1 %v1913_v59  ;;  %898 = vmatpush.bf16.msrb.mxu0 %v1945_v60  ;;  %v574_v59 = vrot.slane %v2223_v30, 5  ;;  %v1958_v60 = vld [vmem:[%s2625_s1 + $0x180] sm:$0xff] }
  0x3d   : > { %1120 = vmatpush.bf16.msrb.mxu2 %v1961_v16  ;;  %782 = vmatmul.bf16.gmra.mxu3 %v714_v15  ;;  %v1978_v30 = vld [vmem:[%s2625_s1 + $0x220] sm:$0xff]  ;;  %v1953_v16 = vld [vmem:[%s2625_s1 + $0x158] sm:$0xff] }
  0x3e   : > { %670 = vmatmul.bf16.gmra.mxu2 %v2355_v4  ;;  %1239 = vmatpush.bf16.msrb.mxu3 %v1969_v32  ;;  %v2472_v15 = vsel %vm2155_vm5, %v1568_v55, %v574_v59  ;;  %v1858_v59 = vrot.slane %v189_v48, 9 }
  0x40   : > { %509 = vmatpush.bf16.msrb.mxu1 %v1912_v6  ;;  %899 = vmatpush.bf16.msrb.mxu0 %v1944_v7  ;;  %v1954_v6 = vld [vmem:[%s2625_s1 + $0x160] sm:$0xff]  ;;  %v2468_v7 = vsel %vm2155_vm5, %v1567_v50, %v570_v52 }
  0x41   : > { %1121 = vmatpush.bf16.msrb.mxu2 %v1960_v29  ;;  %v599_v17 = vunpack.c.l.b16 %v2468_v7  ;;  %v447_v29 = vunpack.c.l.b16 %v2180_v3  ;;  %v1966_v3 = vld [vmem:[%s2625_s1 + $0x1c0] sm:$0xff] }
  0x42   : > { %1240 = vmatpush.bf16.msrb.mxu3 %v1968_v47 }
  0x44   : > { %510 = vmatpush.bf16.msrb.mxu1 %v1911_v18  ;;  %900 = vmatpush.bf16.msrb.mxu0 %v1943_v31  ;;  %v600_v18 = vunpack.c.l.b16 %v2472_v15  ;;  %v712_v31 = vunpack.c.l.b16 %v2480_v19 }
  0x45   : > { %1122 = vmatpush.bf16.msrb.mxu2 %v1959_v23 }
  0x46   : > { %1241 = vmatpush.bf16.msrb.mxu3 %v1967_v25  ;;  %v2497_v32 = vpack.c.b16 %v600_v18, %v599_v17  ;;  %v716_v11 = vpack.c.b16 %v712_v31, %v447_v29 }
  0x48   : > { %511 = vmatpush.bf16.msrb.mxu1 %v1910_v9  ;;  %901 = vmatpush.bf16.msrb.mxu0 %v1942_v36  ;;  %v810_v9 = vshll.u32 %v2480_v19, 16  ;;  %v809_v36 = vrot.slane %v807_v1, 4 }
  0x49   : > { %1123 = vmatpush.bf16.msrb.mxu2 %v1958_v60 }
  0x4a   : > { %1242 = vmatpush.bf16.msrb.mxu3 %v1966_v3  ;;  %v812_v37 = vrot.slane %v810_v9, 5 }
  0x4b   : > { %512 = vmatmul.bf16.vlgmr.msrb.gmra.mxu1 %v448_v44  ;;  %902 = vmatmul.bf16.vlgmr.msrb.gmra.mxu0 %v838_v20  ;;  %v840_v44 = vpack.c.b16 %v2328_v53, %v2195_v14  ;;  %v451_v53 = vpack.c.b16 %v447_v29, %v446_v24 }
  0x4c   : > { %1010 = vmatpush.bf16.msra.mxu1 %v1957_v34  ;;  %1345 = vmatpush.bf16.msra.mxu0 %v1981_v38  ;;  %v1975_v34 = vld [vmem:[%s2625_s1 + $0x208] sm:$0xff]  ;;  %v813_v20 = vor.u32 %v812_v37, %v809_v36 }
  0x4d   : > { %787 = vmatmul.bf16.gmra.mxu3 %v715_v62  ;;  %2013 = vmatpush.bf16.msra.mxu2 %v1981_v38  ;;  %v188_v38 = vld [vmem:[%s2097_s6 + $0x44] sm:$0x1] }
  0x4e   : > { %675 = vmatmul.bf16.gmra.mxu2 %v2428_v40  ;;  %v814_v23 = vrot.slane %v813_v20, 4  ;;  %v934_v55 = vrot.slane %v188_v38, 5 }
  0x50   : > { %1011 = vmatpush.bf16.msra.mxu1 %v1956_v43  ;;  %1346 = vmatpush.bf16.msra.mxu0 %v1980_v46  ;;  %v450_v43 = vpack.c.b16 %v445_v5, %v444_v2  ;;  %v190_v5 = vld [vmem:[%s2097_s6 + $0x4c] sm:$0x1] }
  0x51   : > { %2014 = vmatpush.bf16.msra.mxu2 %v1980_v46  ;;  %v816_v46 = vshll.u32 %v188_v38, 16  ;;  %v1163_v24 = vshll.u32 %v190_v5, 16 }
  0x53   : > { %v818_v62 = vrot.slane %v816_v46, 5  ;;  %v1165_v47 = vrot.slane %v1163_v24, 5 }
  0x54   : > { %1012 = vmatpush.bf16.msra.mxu1 %v1955_v28  ;;  %1347 = vmatpush.bf16.msra.mxu0 %v1979_v49  ;;  %v1974_v28 = vld [vmem:[%s2625_s1 + $0x200] sm:$0xff] }
  0x55   : > { %2015 = vmatpush.bf16.msra.mxu2 %v1979_v49  ;;  %v819_v10 = vsel %vm2149_vm4, %v814_v23, %v818_v62  ;;  %v1065_v49 = vunpack.c.l.b16 %v189_v48 }
  0x56   : > { %v837_v14 = vunpack.c.l.b16 %v819_v10 }
  0x57   : > { %v1066_v52 = vpack.c.b16 %v1065_v49, %v712_v31 }
  0x58   : > { %1013 = vmatpush.bf16.msra.mxu1 %v1954_v6  ;;  %1348 = vmatpush.bf16.msra.mxu0 %v1978_v30  ;;  %v841_v2 = vpack.c.b16 %v837_v14, %v2330_v54 }
  0x59   : > { %2016 = vmatpush.bf16.msra.mxu2 %v1978_v30 }
  0x5b   : > { %517 = vmatmul.bf16.gmra.mxu1 %v449_v22  ;;  %907 = vmatmul.bf16.gmra.mxu0 %v839_v26 }
  0x5c   : > { %1014 = vmatpush.bf16.msra.mxu1 %v1953_v16  ;;  %1349 = vmatpush.bf16.msra.mxu0 %v1977_v27 }
  0x5d   : > { %792 = vmatmul.bf16.gmra.mxu3 %v716_v11  ;;  %2017 = vmatpush.bf16.msra.mxu2 %v1977_v27 }
  0x5e   : > { %680 = vmatmul.bf16.gmra.mxu2 %v2497_v32 }
  0x60   : > { %1015 = vmatpush.bf16.msra.mxu1 %v1952_v21  ;;  %1350 = vmatpush.bf16.msra.mxu0 %v1976_v63 }
  0x61   : > { %2018 = vmatpush.bf16.msra.mxu2 %v1976_v63 }
  0x64   : > { %1016 = vmatpush.bf16.msra.mxu1 %v1951_v13  ;;  %1351 = vmatpush.bf16.msra.mxu0 %v1975_v34 }
  0x65   : > { %2019 = vmatpush.bf16.msra.mxu2 %v1975_v34 }
  0x68   : > { %1017 = vmatpush.bf16.msra.mxu1 %v1950_v56  ;;  %1352 = vmatpush.bf16.msra.mxu0 %v1974_v28 }
  0x69   : > { %2020 = vmatpush.bf16.msra.mxu2 %v1974_v28 }
  0x6b   : > { %522 = vmatmul.bf16.gmra.mxu1 %v450_v43  ;;  %912 = vmatmul.bf16.gmra.mxu0 %v840_v44 }
  0x6d   : > { %1243 = vmatmul.bf16.vlgmr.msrb.gmra.mxu3 %v2349_v0  ;;  %v1159_v0 = vrot.slane %v1157_v12, 5 }
  0x6e   : > { %1124 = vmatmul.bf16.vlgmr.msrb.gmra.mxu2 %v449_v22 }
  0x6f   : > { %v1160_v58 = vor.u32 %v1159_v0, %v1156_v39 }
  0x71   : > { %v1161_v54 = vrot.slane %v1160_v58, 4 }
  0x7b   : > { %527 = vmatmul.bf16.gmra.mxu1 %v451_v53  ;;  %917 = vmatmul.bf16.gmra.mxu0 %v841_v2 }
  0x7d   : > { %1248 = vmatmul.bf16.gmra.mxu3 %v2231_v35  ;;  %v1166_v35 = vsel %vm2149_vm4, %v1161_v54, %v1165_v47 }
  0x7e   : > { %1129 = vmatmul.bf16.gmra.mxu2 %v450_v43  ;;  %v1184_v50 = vunpack.c.l.b16 %v1166_v35 }
  0x8b   : > { %1018 = vmatmul.bf16.vlgmr.msra.gmra.mxu1 %v2293_v41  ;;  %1353 = vmatmul.bf16.vlgmr.msra.gmra.mxu0 %v2355_v4  ;;  %v1185_v41 = vpack.c.b16 %v1184_v50, %v837_v14  ;;  %v1713_v4 = vrot.slane %v2480_v19, 9 }
  0x8d   : > { %1253 = vmatmul.bf16.gmra.mxu3 %v2345_v61  ;;  %v1275_v61 = vrot.slane %v190_v5, 5  ;;  %v935_v60 = vsel %vm2155_vm5, %v1713_v4, %v934_v55 }
  0x8e   : > { %1134 = vmatmul.bf16.gmra.mxu2 %v451_v53  ;;  %v953_v6 = vunpack.c.l.b16 %v935_v60 }
  0x8f   : > { %v1276_v45 = vsel %vm2155_vm5, %v1858_v59, %v1275_v61 }
  0x90   : > { %v1294_v25 = vunpack.c.l.b16 %v1276_v45  ;;  %v957_v51 = vpack.c.b16 %v953_v6, %v600_v18 }
  0x92   : > { %v1295_v19 = vpack.c.b16 %v1294_v25, %v953_v6 }
  0x9b   : > { %1023 = vmatmul.bf16.gmra.mxu1 %v955_v8  ;;  %1358 = vmatmul.bf16.gmra.mxu0 %v2428_v40  ;;  %v956_v40 = vpack.c.b16 %v599_v17, %v598_v42 }
  0x9d   : > { %1258 = vmatmul.bf16.gmra.mxu3 %v1185_v41 }
  0x9e   : > { %1139 = vmatmul.bf16.gmra.mxu2 %v1066_v52 }
  0xa8   : > { %v422_v30 = vpop.f32.mrf.mxu1  ;;  %v412_v16 = vpop.f32.mrf.mxu0 }
  0xab   : > { %1028 = vmatmul.bf16.gmra.mxu1 %v956_v40  ;;  %1363 = vmatmul.bf16.gmra.mxu0 %v2497_v32 }
  0xae   : > { %1368 = vmatmul.bf16.vlgmr.msra.gmra.mxu2 %v1295_v19 }
  0xb0   : > { %v424_v22 = vpop.f32.mrf.mxu1  ;;  %v414_v26 = vpop.f32.mrf.mxu0 }
  0xb1   : > { %v666_v21 = vpop.f32.mrf.mxu2  ;;  %v778_v29 = vpop.f32.mrf.mxu3 }
  0xb8   : > { %v427_v11 = vpop.f32.mrf.mxu1  ;;  %v417_v33 = vpop.f32.mrf.mxu0 }
  0xb9   : > { %v668_v31 = vpop.f32.mrf.mxu2  ;;  %v2565_v13 = vpop.f32.mrf.mxu3 }
  0xbb   : > { %1033 = vmatmul.bf16.gmra.mxu1 %v957_v51 }
  0xc0   : > { %v429_v7 = vpop.f32.mrf.mxu1  ;;  %v419_v17 = vpop.f32.mrf.mxu0 }
  0xc1   : > { %v671_v42 = vpop.f32.mrf.mxu2  ;;  %v783_v3 = vpop.f32.mrf.mxu3 }
  0xc8   : > { %v513_v32 = vpop.f32.mrf.mxu1  ;;  %v903_v63 = vpop.f32.mrf.mxu0 }
  0xc9   : > { %v673_v27 = vpop.f32.mrf.mxu2  ;;  %v514_v56 = vadd.f32 %v513_v32, %v412_v16  ;;  %v2567_v9 = vpop.f32.mrf.mxu3 }
  0xcb   : > { %v686_v1 = vadd.f32 %v666_v21, %v514_v56 }
  0xcd   : > { %v798_v34 = vadd.f32 %v778_v29, %v686_v1 }
  0xcf   : > { %v923_v15 = vadd.f32 %v903_v63, %v798_v34 }
  0xd0   : > { %v515_v36 = vpop.f32.mrf.mxu1  ;;  %v905_v37 = vpop.f32.mrf.mxu0 }
  0xd1   : > { %v676_v18 = vpop.f32.mrf.mxu2  ;;  %v516_v38 = vadd.f32 %v515_v36, %v414_v26  ;;  %v788_v44 = vpop.f32.mrf.mxu3 }
  0xd3   : > { %v687_v43 = vadd.f32 %v668_v31, %v516_v38 }
  0xd8   : > { %v518_v46 = vpop.f32.mrf.mxu1  ;;  %v908_v28 = vpop.f32.mrf.mxu0 }
  0xd9   : > { %v678_v20 = vpop.f32.mrf.mxu2  ;;  %v519_v23 = vadd.f32 %v518_v46, %v417_v33  ;;  %v2569_v53 = vpop.f32.mrf.mxu3 }
  0xdb   : > { %v688_v62 = vadd.f32 %v671_v42, %v519_v23 }
  0xdd   : > { %v800_v8 = vadd.f32 %v783_v3, %v688_v62 }
  0xdf   : > { %v925_v10 = vadd.f32 %v908_v28, %v800_v8 }
  0xe0   : > { %v520_v2 = vpop.f32.mrf.mxu1  ;;  %v2571_v48 = vpop.f32.mrf.mxu0 }
  0xe1   : > { %v681_v14 = vpop.f32.mrf.mxu2  ;;  %v521_v57 = vadd.f32 %v520_v2, %v419_v17  ;;  %v793_v24 = vpop.f32.mrf.mxu3  ;;  %v799_v17 = vadd.f32 %v2565_v13, %v687_v43 }
  0xe3   : > { %v689_v12 = vadd.f32 %v673_v27, %v521_v57  ;;  %v924_v3 = vadd.f32 %v905_v37, %v799_v17 }
  0xe5   : > { %v801_v46 = vadd.f32 %v2567_v9, %v689_v12 }
  0xe7   : > { %v926_v57 = vadd.f32 %v2571_v48, %v801_v46 }
  0xe8   : > { %v523_v0 = vpop.f32.mrf.mxu1  ;;  %v913_v5 = vpop.f32.mrf.mxu0 }
  0xe9   : > { %v683_v39 = vpop.f32.mrf.mxu2  ;;  %v524_v58 = vadd.f32 %v523_v0, %v422_v30  ;;  %v2579_v55 = vpop.f32.mrf.mxu3 }
  0xeb   : > { %v690_v54 = vadd.f32 %v676_v18, %v524_v58 }
  0xed   : > { %v802_v47 = vadd.f32 %v788_v44, %v690_v54 }
  0xef   : > { %v2573_v49 = vadd.f32 %v913_v5, %v802_v47 }
  0xf0   : > { %v525_v50 = vpop.f32.mrf.mxu1  ;;  %v2575_v52 = vpop.f32.mrf.mxu0 }
  0xf1   : > { %v1125_v35 = vpop.f32.mrf.mxu2  ;;  %v526_v41 = vadd.f32 %v525_v50, %v424_v22  ;;  %v1244_v40 = vpop.f32.mrf.mxu3 }
  0xf3   : > { %v2577_v4 = vadd.f32 %v678_v20, %v526_v41 }
  0xf8   : > { %v528_v61 = vpop.f32.mrf.mxu1  ;;  %v918_v60 = vpop.f32.mrf.mxu0 }
  0xf9   : > { %v1127_v59 = vpop.f32.mrf.mxu2  ;;  %v529_v45 = vadd.f32 %v528_v61, %v427_v11  ;;  %v1246_v22 = vpop.f32.mrf.mxu3  ;;  %v803_v61 = vadd.f32 %v2569_v53, %v2577_v4 }
  0xfb   : > { %v692_v6 = vadd.f32 %v681_v14, %v529_v45 }
  0xfd   : > { %v804_v25 = vadd.f32 %v793_v24, %v692_v6 }
  0xff   : > { %v2581_v30 = vadd.f32 %v918_v60, %v804_v25 }
 0x100   : > { %v530_v19 = vpop.f32.mrf.mxu1  ;;  %v2583_v21 = vpop.f32.mrf.mxu0 }
 0x101   : > { %v1130_v16 = vpop.f32.mrf.mxu2  ;;  %v531_v26 = vadd.f32 %v530_v19, %v429_v7  ;;  %v1249_v1 = vpop.f32.mrf.mxu3  ;;  %v2591_v7 = vld [vmem:[%s2626_s2] ss:$0 sm:$0xff] }
 0x103   : > { %v2585_v29 = vadd.f32 %v683_v39, %v531_v26 }
 0x108   : > { %v1019_v51 = vpop.f32.mrf.mxu1  ;;  %v1354_v31 = vpop.f32.mrf.mxu0 }
 0x109   : > { %v1039_v33 = vadd.f32 %v1019_v51, %v923_v15  ;;  %v1132_v42 = vpop.f32.mrf.mxu2  ;;  %v1251_v8 = vpop.f32.mrf.mxu3 }
 0x10b   : > { %v1145_v11 = vadd.f32 %v1125_v35, %v1039_v33 }
 0x10d   : > { %v1264_v27 = vadd.f32 %v1244_v40, %v1145_v11  ;;  %v928_v40 = vadd.f32 %v2575_v52, %v803_v61 }
 0x10f   : > { %v1374_v34 = vadd.f32 %v1354_v31, %v1264_v27  ;;  %v805_v27 = vadd.f32 %v2579_v55, %v2585_v29 }
 0x110   : > { %v1021_v32 = vpop.f32.mrf.mxu1  ;;  %v1356_v63 = vpop.f32.mrf.mxu0 }
 0x111   : > { %v1040_v56 = vadd.f32 %v1021_v32, %v924_v3  ;;  %v1135_v36 = vpop.f32.mrf.mxu2  ;;  %v1386_v38 = vadd.f32 %v2591_v7, %v1374_v34  ;;  %v1254_v24 = vpop.f32.mrf.mxu3 }
 0x113   : > { %v1146_v18 = vadd.f32 %v1127_v59, %v1040_v56  ;;  %v1394_v28 = vmax.f32 %v1386_v38, 0.0 }
 0x115   : > { %v1265_v15 = vadd.f32 %v1246_v22, %v1146_v18  ;;  %v930_v18 = vadd.f32 %v2583_v21, %v805_v27 }
 0x117   : > { %v1375_v13 = vadd.f32 %v1356_v63, %v1265_v15 }
 0x118   : > { %v1024_v43 = vpop.f32.mrf.mxu1  ;;  %v1359_v44 = vpop.f32.mrf.mxu0 }
 0x119   : > { %v1387_v37 = vadd.f32 %v2591_v7, %v1375_v13  ;;  %v1041_v20 = vadd.f32 %v1024_v43, %v925_v10  ;;  %v1137_v2 = vpop.f32.mrf.mxu2  ;;  %v1256_v19 = vpop.f32.mrf.mxu3 }
 0x11b   : > { %v1395_v23 = vmax.f32 %v1387_v37, 0.0  ;;  %v1147_v62 = vadd.f32 %v1130_v16, %v1041_v20 }
 0x11d   : > { %v1985_v14 = vpack.c.bf16 %v1395_v23, %v1394_v28  ;;  %v1266_v39 = vadd.f32 %v1249_v1, %v1147_v62 }
 0x11f   : > { %1986 = vst [vmem:[%s2600_s21] sm:$0xff] %v1985_v14   ;;  %v1376_v9 = vadd.f32 %v1359_v44, %v1266_v39 }
 0x120   : > { %v1026_v0 = vpop.f32.mrf.mxu1  ;;  %v1361_v10 = vpop.f32.mrf.mxu0 }
 0x121   : > { %v1042_v5 = vadd.f32 %v1026_v0, %v926_v57  ;;  %v1388_v54 = vadd.f32 %v2591_v7, %v1376_v9  ;;  %v1140_v35 = vpop.f32.mrf.mxu2  ;;  %v1259_v52 = vpop.f32.mrf.mxu3 }
 0x123   : > { %v1148_v12 = vadd.f32 %v1132_v42, %v1042_v5  ;;  %v1396_v60 = vmax.f32 %v1388_v54, 0.0 }
 0x125   : > { %v1267_v58 = vadd.f32 %v1251_v8, %v1148_v12 }
 0x127   : > { %v1377_v47 = vadd.f32 %v1361_v10, %v1267_v58 }
 0x128   : > { %v1029_v50 = vpop.f32.mrf.mxu1  ;;  %v1364_v48 = vpop.f32.mrf.mxu0 }
 0x129   : > { %v1389_v41 = vadd.f32 %v2591_v7, %v1377_v47  ;;  %v1043_v59 = vadd.f32 %v1029_v50, %v2573_v49  ;;  %v1142_v51 = vpop.f32.mrf.mxu2  ;;  %v1261_v44 = vpop.f32.mrf.mxu3 }
 0x12b   : > { %v1397_v45 = vmax.f32 %v1389_v41, 0.0  ;;  %v1149_v6 = vadd.f32 %v1135_v36, %v1043_v59 }
 0x12d   : > { %v1990_v25 = vpack.c.bf16 %v1397_v45, %v1396_v60  ;;  %v1268_v16 = vadd.f32 %v1254_v24, %v1149_v6 }
 0x12f   : > { %2002 = vst [vmem:[%s2600_s21 + $0x8] sm:$0xff] %v1990_v25   ;;  %v1378_v31 = vadd.f32 %v1364_v48, %v1268_v16 }
 0x130   : > { %v1031_v26 = vpop.f32.mrf.mxu1  ;;  %v1366_v49 = vpop.f32.mrf.mxu0 }
 0x131   : > { %v1044_v22 = vadd.f32 %v1031_v26, %v928_v40  ;;  %v1390_v17 = vadd.f32 %v2591_v7, %v1378_v31  ;;  %v1369_v1 = vpop.f32.mrf.mxu2 }
 0x133   : > { %v1150_v33 = vadd.f32 %v1137_v2, %v1044_v22  ;;  %v1398_v32 = vmax.f32 %v1390_v17, 0.0 }
 0x135   : > { %v1269_v42 = vadd.f32 %v1256_v19, %v1150_v33 }
 0x137   : > { %v1379_v53 = vadd.f32 %v1366_v49, %v1269_v42 }
 0x138   : > { %v1034_v4 = vpop.f32.mrf.mxu1 }
 0x139   : > { %v1391_v11 = vadd.f32 %v2591_v7, %v1379_v53  ;;  %v1045_v3 = vadd.f32 %v1034_v4, %v2581_v30  ;;  %v1371_v37 = vpop.f32.mrf.mxu2 }
 0x13b   : > { %v1399_v63 = vmax.f32 %v1391_v11, 0.0  ;;  %v1151_v56 = vadd.f32 %v1140_v35, %v1045_v3 }
 0x13d   : > { %v1995_v34 = vpack.c.bf16 %v1399_v63, %v1398_v32  ;;  %v1270_v36 = vadd.f32 %v1259_v52, %v1151_v56 }
 0x13f   : > { %2003 = vst [vmem:[%s2600_s21 + $0x10] sm:$0xff] %v1995_v34   ;;  %v1380_v13 = vadd.f32 %v1369_v1, %v1270_v36 }
 0x140   : > { %v1036_v15 = vpop.f32.mrf.mxu1 }
 0x141   : > { %v1046_v38 = vadd.f32 %v1036_v15, %v930_v18  ;;  %v1392_v20 = vadd.f32 %v2591_v7, %v1380_v13 }
 0x143   : > { %v1152_v43 = vadd.f32 %v1142_v51, %v1046_v38  ;;  %v1400_v46 = vmax.f32 %v1392_v20, 0.0 }
 0x145   : > { %v1271_v30 = vadd.f32 %v1261_v44, %v1152_v43 }
 0x147   : > { %v1381_v55 = vadd.f32 %v1371_v37, %v1271_v30 }
 0x149   : > { %v1393_v29 = vadd.f32 %v2591_v7, %v1381_v55 }
 0x14b   : > { %v1401_v28 = vmax.f32 %v1393_v29, 0.0 }
 0x14d   : > { %v2000_v23 = vpack.c.bf16 %v1401_v28, %v1400_v46 }
 0x14f   : > { %2004 = vst [vmem:[%s2600_s21 + $0x18] sm:$0xff] %v2000_v23  }
 0x150 PF: > { %s13_s12 = sadd.s32 1, %s2037_s12  }
 0x151   : > { %p10_p4 = scmp.ge.s32.totalorder %s13_s12, 4  }
 0x153   :  { %12 = sbr.rel (!%p10_p4) target bundleno = 1 (0x1), region = 70 }

</bundles_post_ra>
